<compile_context>
chip_gen: v5e
topology: v5e:2x2
jax: 0.10.0
libtpu: 0.0.40
codegen_flags: <defaults>
</compile_context>

<pallas_src>
import functools

import jax
import jax.numpy as jnp
from jax import lax
from jax.experimental import pallas as pl
from jax.experimental.pallas import tpu as pltpu


# ---------------------------------------------------------------------------
# Fused kernel
# ---------------------------------------------------------------------------
def _make_fused_kernel(num_heads, head_dim, q_rows, kv_steps, compute_dtype):
    h, dh, nh = num_heads, head_dim, q_rows          # q_rows = rows of x per head
    dim = h * dh

    def kernel(x_ref, c_ref, wq_ref, bq_ref, wkv_ref, bkv_ref, wo_ref, bo_ref,
               o_ref, q_scr, m_scr, l_scr, acc_scr):
        t = pl.program_id(2)                          # KV-tile index (last, arbitrary)

        def split_heads(mat):
            # (rows, D) -> (rows*h, dh): head-local "virtual token" view of the
            # module's flat reshape, up to a within-head row permutation that is
            # inverted again in the epilogue.  Static lane slices + sublane
            # concat only -- no Mosaic reshape.
            return jnp.concatenate(
                [mat[:, ci * dh:(ci + 1) * dh] for ci in range(h)], axis=0)

        # -- init: Q projection (scale pre-folded) + online-softmax state ----
        @pl.when(t == 0)
        def _init():
            x = x_ref[0].astype(compute_dtype)                          # (nh, D)
            q = jnp.dot(x, wq_ref[...].astype(compute_dtype),
                        preferred_element_type=jnp.float32) + bq_ref[...]
            q_scr[...] = split_heads(q.astype(compute_dtype))           # (nh*h, dh)
            m_scr[...] = jnp.full_like(m_scr, -jnp.inf)
            l_scr[...] = jnp.zeros_like(l_scr)
            acc_scr[...] = jnp.zeros_like(acc_scr)

        # -- fused K|V projection for this KV tile (lane-dense 2D-wide slab) -
        c = c_ref[0].astype(compute_dtype)                              # (tm, D)
        kv = jnp.dot(c, wkv_ref[...].astype(compute_dtype),
                     preferred_element_type=jnp.float32) + bkv_ref[...]
        kv = kv.astype(compute_dtype)
        k_hp = split_heads(kv[:, :dim])                                 # (tm*h, dh)
        v_hp = split_heads(kv[:, dim:])                                 # (tm*h, dh)

        # -- flash-style online-softmax update over KV tiles ------------------
        q_hp = q_scr[...]                                               # (nh*h, dh)
        s = lax.dot_general(q_hp, k_hp, (((1,), (1,)), ((), ())),
                            preferred_element_type=jnp.float32)         # (nh*h, tm*h)
        m_prev = m_scr[...]
        m_new = jnp.maximum(m_prev, jnp.max(s, axis=-1, keepdims=True))
        alpha = jnp.exp(m_prev - m_new)
        p = jnp.exp(s - m_new)                                          # f32 VPU math
        l_scr[...] = alpha * l_scr[...] + jnp.sum(p, axis=-1, keepdims=True)
        acc_scr[...] = alpha * acc_scr[...] + jnp.dot(
            p.astype(compute_dtype), v_hp, preferred_element_type=jnp.float32)
        m_scr[...] = m_new

        # -- epilogue: normalize AFTER PV, inverse head split, out projection -
        @pl.when(t == kv_steps - 1)
        def _finalize():
            out_hp = acc_scr[...] * (1.0 / l_scr[...])                  # exact recip
            out_slab = jnp.concatenate(                                 # (nh, D)
                [out_hp[cb * nh:(cb + 1) * nh, :] for cb in range(h)], axis=1)
            y = jnp.dot(out_slab.astype(compute_dtype),
                        wo_ref[...].astype(compute_dtype),
                        preferred_element_type=jnp.float32) + bo_ref[...]
            o_ref[0] = y.astype(o_ref.dtype)                            # lane-dense

    return kernel


# ---------------------------------------------------------------------------
# Parameter prep (one-time) and wrapper
# ---------------------------------------------------------------------------
def prepare_params(params, dim, num_heads, *, mxu_dtype=jnp.float32):
    """Transpose PyTorch (out,in) weights to (in,out), fold the softmax scale
    into the Q projection, concatenate Wk|Wv, cast matmul weights to the MXU
    operand dtype.  Biases stay f32 (added to the f32 accumulators)."""
    scale = float(dim // num_heads) ** -0.5
    wq_t = jnp.transpose(params["wq"]).astype(jnp.float32) * scale
    wk_t = jnp.transpose(params["wk"])
    wv_t = jnp.transpose(params["wv"])
    return {
        "wq_t": wq_t.astype(mxu_dtype),
        "bq": (params["bq"].astype(jnp.float32) * scale).reshape(1, dim),
        "wkv_t": jnp.concatenate([wk_t, wv_t], axis=1).astype(mxu_dtype),
        "bkv": jnp.concatenate([params["bk"], params["bv"]]
                               ).astype(jnp.float32).reshape(1, 2 * dim),
        "wo_t": jnp.transpose(params["wo"]).astype(mxu_dtype),
        "bo": params["bo"].astype(jnp.float32).reshape(1, dim),
    }


def cross_attention_forward(prep, x, context, num_heads, *,
                            compute_dtype=jnp.float32, kv_tile=None):
    """Fused Pallas implementation of CrossAttention.forward."""
    B, N, D = x.shape
    _, M, _ = context.shape
    h = num_heads
    if D % h != 0:
        raise ValueError("dim must be divisible by num_heads")
    dh = D // h
    if N % h != 0 or M % h != 0:
        # TODO(synk): the module's flat head split is defined for any N, M; the
        # fused kernel assumes head boundaries fall on row boundaries.
        raise ValueError("fused kernel requires seq lengths divisible by num_heads")
    nh, mh = N // h, M // h
    tm = mh if kv_tile is None else int(kv_tile)
    if mh % tm != 0:
        raise ValueError("kv_tile must divide context_len // num_heads")
    kv_steps = mh // tm
    if not (nh % 8 == 0 or nh == N) or not (tm % 8 == 0 or tm == M):
        raise ValueError("per-head row blocks must be multiples of 8 rows")
    # TODO(synk): for very long x sequences add a further query-tile grid axis
    # (split nh into chunks); each virtual query row is independent.

    kernel = _make_fused_kernel(h, dh, nh, kv_steps, compute_dtype)

    return pl.pallas_call(
        kernel,
        out_shape=jax.ShapeDtypeStruct((B, N, D), x.dtype),
        grid=(B, h, kv_steps),
        in_specs=[
            # x rows owned by this head (sequence tile == head slab)
            pl.BlockSpec((1, nh, D), lambda b, hh, t: (b, hh, 0)),
            # context KV tile of this head
            pl.BlockSpec((1, tm, D), lambda b, hh, t: (b, hh * kv_steps + t, 0)),
            pl.BlockSpec((D, D), lambda b, hh, t: (0, 0)),       # Wq (scale folded)
            pl.BlockSpec((1, D), lambda b, hh, t: (0, 0)),       # bq (scaled)
            pl.BlockSpec((D, 2 * D), lambda b, hh, t: (0, 0)),   # Wk|Wv
            pl.BlockSpec((1, 2 * D), lambda b, hh, t: (0, 0)),   # bk|bv
            pl.BlockSpec((D, D), lambda b, hh, t: (0, 0)),       # Wo
            pl.BlockSpec((1, D), lambda b, hh, t: (0, 0)),       # bo
        ],
        out_specs=pl.BlockSpec((1, nh, D), lambda b, hh, t: (b, hh, 0)),
        scratch_shapes=[
            pltpu.VMEM((N, dh), compute_dtype),   # Q in head-local virtual-token view
            pltpu.VMEM((N, 1), jnp.float32),      # running max
            pltpu.VMEM((N, 1), jnp.float32),      # running softmax denom
            pltpu.VMEM((N, dh), jnp.float32),     # f32 output accumulator
        ],
        compiler_params=pltpu.CompilerParams(
            dimension_semantics=("parallel", "parallel", "arbitrary"),
            vmem_limit_bytes=64 * 1024 * 1024,
        ),
    )(x, context, prep["wq_t"], prep["bq"], prep["wkv_t"], prep["bkv"],
      prep["wo_t"], prep["bo"])


# ---------------------------------------------------------------------------
# Pure-JAX reference (mirrors the PyTorch forward exactly, raw params)
# ---------------------------------------------------------------------------
def reference_forward(params, x, context, num_heads):
    hp = lax.Precision.HIGHEST

    def lin(t, w, b):
        return jnp.einsum("bsd,od->bso", t, w, precision=hp) + b

    q = lin(x, params["wq"], params["bq"])
    k = lin(context, params["wk"], params["bk"])
    v = lin(context, params["wv"], params["bv"])
    B, N, dim = q.shape
    M = k.shape[1]
    h = num_heads
    dh = dim // h
    q = q.reshape(B, h, N, dh)
    k = k.reshape(B, h, M, dh)
    v = v.reshape(B, h, M, dh)
    attn = jnp.einsum("bhid,bhjd->bhij", q, k, precision=hp) * (dh ** -0.5)
    attn = jax.nn.softmax(attn, axis=-1)
    out = jnp.einsum("bhij,bhjd->bhid", attn, v, precision=hp)
    out = out.reshape(B, N, dim)
    return lin(out, params["wo"], params["bo"])


# ---------------------------------------------------------------------------
# Main
# ---------------------------------------------------------------------------
if __name__ == "__main__":
    # Small shapes; seq lengths divisible by heads and per-head rows % 8 == 0.
    B, N, M, DIM, HEADS = 2, 64, 128, 64, 8
    KV_TILE = 8     # context rows per head per KV step -> 2 flash steps per head

    key = jax.random.PRNGKey(0)
    kx, kc, kq, kk, kv, ko, kbq, kbk, kbv, kbo = jax.random.split(key, 10)

    x = jax.random.normal(kx, (B, N, DIM), dtype=jnp.float32)
    context = jax.random.normal(kc, (B, M, DIM), dtype=jnp.float32)

    # PyTorch nn.Linear layout: weight (out, in), bias (out,)
    params = {
        "wq": 0.05 * jax.random.normal(kq, (DIM, DIM), dtype=jnp.float32),
        "wk": 0.05 * jax.random.normal(kk, (DIM, DIM), dtype=jnp.float32),
        "wv": 0.05 * jax.random.normal(kv, (DIM, DIM), dtype=jnp.float32),
        "wo": 0.05 * jax.random.normal(ko, (DIM, DIM), dtype=jnp.float32),
        "bq": 0.01 * jax.random.normal(kbq, (DIM,), dtype=jnp.float32),
        "bk": 0.01 * jax.random.normal(kbk, (DIM,), dtype=jnp.float32),
        "bv": 0.01 * jax.random.normal(kbv, (DIM,), dtype=jnp.float32),
        "bo": 0.01 * jax.random.normal(kbo, (DIM,), dtype=jnp.float32),
    }

    ref = jax.block_until_ready(reference_forward(params, x, context, HEADS))

    # ---- f32 MXU-operand path: parity check vs HIGHEST-precision reference --
    prep32 = prepare_params(params, DIM, HEADS, mxu_dtype=jnp.float32)
    fwd32 = jax.jit(functools.partial(
        cross_attention_forward, num_heads=HEADS,
        compute_dtype=jnp.float32, kv_tile=KV_TILE))
    out32 = jax.block_until_ready(fwd32(prep32, x, context))
    assert out32.shape == (B, N, DIM)
    # Tolerance covers default (non-HIGHEST) MXU precision, scale folding and
    # the flash-softmax reassociation; any structural error is orders larger.
    assert jnp.allclose(out32, ref, atol=5e-3, rtol=5e-3), "f32 kernel mismatch"

    # ---- bf16 MXU-operand path (production config: f32 accum + f32 softmax) -
    prep16 = prepare_params(params, DIM, HEADS, mxu_dtype=jnp.bfloat16)
    fwd16 = jax.jit(functools.partial(
        cross_attention_forward, num_heads=HEADS,
        compute_dtype=jnp.bfloat16, kv_tile=KV_TILE))
    out16 = jax.block_until_ready(fwd16(prep16, x, context))
    assert jnp.allclose(out16, ref, atol=3e-2, rtol=3e-2), "bf16 kernel mismatch"

    print("KERNEL_OK")
</pallas_src>

<mosaic_0001>
module attributes {stable_mosaic.version = 11 : i64} {
  func.func @kernel(%arg0: i32, %arg1: i32, %arg2: i32, %arg3: memref<1x8x64xf32, #tpu.memory_space<vmem>>, %arg4: memref<1x8x64xf32, #tpu.memory_space<vmem>>, %arg5: memref<64x64xf32, #tpu.memory_space<vmem>>, %arg6: memref<1x64xf32, #tpu.memory_space<vmem>>, %arg7: memref<64x128xf32, #tpu.memory_space<vmem>>, %arg8: memref<1x128xf32, #tpu.memory_space<vmem>>, %arg9: memref<64x64xf32, #tpu.memory_space<vmem>>, %arg10: memref<1x64xf32, #tpu.memory_space<vmem>>, %arg11: memref<1x8x64xf32, #tpu.memory_space<vmem>>, %arg12: memref<64x8xf32, #tpu.memory_space<vmem>>, %arg13: memref<64x1xf32, #tpu.memory_space<vmem>>, %arg14: memref<64x1xf32, #tpu.memory_space<vmem>>, %arg15: memref<64x8xf32, #tpu.memory_space<vmem>>) attributes {dimension_semantics = [#tpu.dimension_semantics<parallel>, #tpu.dimension_semantics<parallel>, #tpu.dimension_semantics<arbitrary>], iteration_bounds = array<i64: 2, 8, 2>, scalar_prefetch = 0 : i64, scratch_operands = 4 : i64, tpu.core_type = #tpu.core_type<tc>, window_params = [{transform_indices = @transform_0, window_bounds = array<i64: 1, 8, 64>}, {transform_indices = @transform_1, window_bounds = array<i64: 1, 8, 64>}, {pipeline_mode = #tpu.pipeline_mode<synchronous>, transform_indices = @transform_2, window_bounds = array<i64: 64, 64>}, {pipeline_mode = #tpu.pipeline_mode<synchronous>, transform_indices = @transform_3, window_bounds = array<i64: 1, 64>}, {pipeline_mode = #tpu.pipeline_mode<synchronous>, transform_indices = @transform_4, window_bounds = array<i64: 64, 128>}, {pipeline_mode = #tpu.pipeline_mode<synchronous>, transform_indices = @transform_5, window_bounds = array<i64: 1, 128>}, {pipeline_mode = #tpu.pipeline_mode<synchronous>, transform_indices = @transform_6, window_bounds = array<i64: 64, 64>}, {pipeline_mode = #tpu.pipeline_mode<synchronous>, transform_indices = @transform_7, window_bounds = array<i64: 1, 64>}, {transform_indices = @transform_8, window_bounds = array<i64: 1, 8, 64>}]} {
    %c0_i32 = arith.constant 0 : i32
    %0 = arith.cmpi eq, %arg2, %c0_i32 : i32
    %1 = arith.extui %0 : i1 to i32
    %c0_i32_0 = arith.constant 0 : i32
    %2 = arith.cmpi ne, %1, %c0_i32_0 : i32
    scf.if %2 {
      %c0_26 = arith.constant 0 : index
      %c0_27 = arith.constant 0 : index
      %c0_28 = arith.constant 0 : index
      %57 = vector.load %arg3[%c0_26, %c0_27, %c0_28] : memref<1x8x64xf32, #tpu.memory_space<vmem>>, vector<1x8x64xf32>
      %58 = vector.shape_cast %57 : vector<1x8x64xf32> to vector<8x64xf32>
      %c0_29 = arith.constant 0 : index
      %c0_30 = arith.constant 0 : index
      %59 = vector.load %arg5[%c0_29, %c0_30] : memref<64x64xf32, #tpu.memory_space<vmem>>, vector<64x64xf32>
      %cst_31 = arith.constant dense<0.000000e+00> : vector<8x64xf32>
      %60 = tpu.matmul %58, %59, %cst_31 {dimension_numbers = #tpu.dot_dimension_numbers<[1], [0], [0], [1], [0, 0, 1, 1], [], []>} : vector<8x64xf32>, vector<64x64xf32>, vector<8x64xf32> -> vector<8x64xf32>
      %c0_32 = arith.constant 0 : index
      %c0_33 = arith.constant 0 : index
      %61 = vector.load %arg6[%c0_32, %c0_33] : memref<1x64xf32, #tpu.memory_space<vmem>>, vector<1x64xf32>
      %62 = vector.broadcast %61 : vector<1x64xf32> to vector<8x64xf32>
      %63 = arith.addf %60, %62 : vector<8x64xf32>
      %64 = vector.extract_strided_slice %63 {offsets = [0, 0], sizes = [8, 8], strides = [1, 1]} : vector<8x64xf32> to vector<8x8xf32>
      %65 = vector.extract_strided_slice %63 {offsets = [0, 8], sizes = [8, 8], strides = [1, 1]} : vector<8x64xf32> to vector<8x8xf32>
      %66 = vector.extract_strided_slice %63 {offsets = [0, 16], sizes = [8, 8], strides = [1, 1]} : vector<8x64xf32> to vector<8x8xf32>
      %67 = vector.extract_strided_slice %63 {offsets = [0, 24], sizes = [8, 8], strides = [1, 1]} : vector<8x64xf32> to vector<8x8xf32>
      %68 = vector.extract_strided_slice %63 {offsets = [0, 32], sizes = [8, 8], strides = [1, 1]} : vector<8x64xf32> to vector<8x8xf32>
      %69 = vector.extract_strided_slice %63 {offsets = [0, 40], sizes = [8, 8], strides = [1, 1]} : vector<8x64xf32> to vector<8x8xf32>
      %70 = vector.extract_strided_slice %63 {offsets = [0, 48], sizes = [8, 8], strides = [1, 1]} : vector<8x64xf32> to vector<8x8xf32>
      %71 = vector.extract_strided_slice %63 {offsets = [0, 56], sizes = [8, 8], strides = [1, 1]} : vector<8x64xf32> to vector<8x8xf32>
      %72 = tpu.concatenate %64, %65, %66, %67, %68, %69, %70, %71 in 0 : vector<8x8xf32>, vector<8x8xf32>, vector<8x8xf32>, vector<8x8xf32>, vector<8x8xf32>, vector<8x8xf32>, vector<8x8xf32>, vector<8x8xf32> -> vector<64x8xf32>
      %c0_34 = arith.constant 0 : index
      %c0_35 = arith.constant 0 : index
      %73 = vector.load %arg12[%c0_34, %c0_35] : memref<64x8xf32, #tpu.memory_space<vmem>>, vector<64x8xf32>
      tpu.vector_store %arg12[%c0_34, %c0_35], %72 {strides = array<i32>} : memref<64x8xf32, #tpu.memory_space<vmem>>, vector<64x8xf32>,
      %cst_36 = arith.constant 0xFF800000 : f32
      %74 = vector.broadcast %cst_36 : f32 to vector<64x1xf32>
      %c0_37 = arith.constant 0 : index
      %c0_38 = arith.constant 0 : index
      %75 = vector.load %arg13[%c0_37, %c0_38] : memref<64x1xf32, #tpu.memory_space<vmem>>, vector<64x1xf32>
      tpu.vector_store %arg13[%c0_37, %c0_38], %74 {strides = array<i32>} : memref<64x1xf32, #tpu.memory_space<vmem>>, vector<64x1xf32>,
      %cst_39 = arith.constant 0.000000e+00 : f32
      %76 = vector.broadcast %cst_39 : f32 to vector<64x1xf32>
      %c0_40 = arith.constant 0 : index
      %c0_41 = arith.constant 0 : index
      %77 = vector.load %arg14[%c0_40, %c0_41] : memref<64x1xf32, #tpu.memory_space<vmem>>, vector<64x1xf32>
      tpu.vector_store %arg14[%c0_40, %c0_41], %76 {strides = array<i32>} : memref<64x1xf32, #tpu.memory_space<vmem>>, vector<64x1xf32>,
      %cst_42 = arith.constant 0.000000e+00 : f32
      %78 = vector.broadcast %cst_42 : f32 to vector<64x8xf32>
      %c0_43 = arith.constant 0 : index
      %c0_44 = arith.constant 0 : index
      %79 = vector.load %arg15[%c0_43, %c0_44] : memref<64x8xf32, #tpu.memory_space<vmem>>, vector<64x8xf32>
      tpu.vector_store %arg15[%c0_43, %c0_44], %78 {strides = array<i32>} : memref<64x8xf32, #tpu.memory_space<vmem>>, vector<64x8xf32>,
    } else {
    }
    %c0 = arith.constant 0 : index
    %c0_1 = arith.constant 0 : index
    %c0_2 = arith.constant 0 : index
    %3 = vector.load %arg4[%c0, %c0_1, %c0_2] : memref<1x8x64xf32, #tpu.memory_space<vmem>>, vector<1x8x64xf32>
    %4 = vector.shape_cast %3 : vector<1x8x64xf32> to vector<8x64xf32>
    %c0_3 = arith.constant 0 : index
    %c0_4 = arith.constant 0 : index
    %5 = vector.load %arg7[%c0_3, %c0_4] : memref<64x128xf32, #tpu.memory_space<vmem>>, vector<64x128xf32>
    %cst = arith.constant dense<0.000000e+00> : vector<8x128xf32>
    %6 = tpu.matmul %4, %5, %cst {dimension_numbers = #tpu.dot_dimension_numbers<[1], [0], [0], [1], [0, 0, 1, 1], [], []>} : vector<8x64xf32>, vector<64x128xf32>, vector<8x128xf32> -> vector<8x128xf32>
    %c0_5 = arith.constant 0 : index
    %c0_6 = arith.constant 0 : index
    %7 = vector.load %arg8[%c0_5, %c0_6] : memref<1x128xf32, #tpu.memory_space<vmem>>, vector<1x128xf32>
    %8 = vector.broadcast %7 : vector<1x128xf32> to vector<8x128xf32>
    %9 = arith.addf %6, %8 : vector<8x128xf32>
    %10 = vector.extract_strided_slice %9 {offsets = [0, 0], sizes = [8, 64], strides = [1, 1]} : vector<8x128xf32> to vector<8x64xf32>
    %11 = vector.extract_strided_slice %10 {offsets = [0, 0], sizes = [8, 8], strides = [1, 1]} : vector<8x64xf32> to vector<8x8xf32>
    %12 = vector.extract_strided_slice %10 {offsets = [0, 8], sizes = [8, 8], strides = [1, 1]} : vector<8x64xf32> to vector<8x8xf32>
    %13 = vector.extract_strided_slice %10 {offsets = [0, 16], sizes = [8, 8], strides = [1, 1]} : vector<8x64xf32> to vector<8x8xf32>
    %14 = vector.extract_strided_slice %10 {offsets = [0, 24], sizes = [8, 8], strides = [1, 1]} : vector<8x64xf32> to vector<8x8xf32>
    %15 = vector.extract_strided_slice %10 {offsets = [0, 32], sizes = [8, 8], strides = [1, 1]} : vector<8x64xf32> to vector<8x8xf32>
    %16 = vector.extract_strided_slice %10 {offsets = [0, 40], sizes = [8, 8], strides = [1, 1]} : vector<8x64xf32> to vector<8x8xf32>
    %17 = vector.extract_strided_slice %10 {offsets = [0, 48], sizes = [8, 8], strides = [1, 1]} : vector<8x64xf32> to vector<8x8xf32>
    %18 = vector.extract_strided_slice %10 {offsets = [0, 56], sizes = [8, 8], strides = [1, 1]} : vector<8x64xf32> to vector<8x8xf32>
    %19 = tpu.concatenate %11, %12, %13, %14, %15, %16, %17, %18 in 0 : vector<8x8xf32>, vector<8x8xf32>, vector<8x8xf32>, vector<8x8xf32>, vector<8x8xf32>, vector<8x8xf32>, vector<8x8xf32>, vector<8x8xf32> -> vector<64x8xf32>
    %20 = vector.extract_strided_slice %9 {offsets = [0, 64], sizes = [8, 64], strides = [1, 1]} : vector<8x128xf32> to vector<8x64xf32>
    %21 = vector.extract_strided_slice %20 {offsets = [0, 0], sizes = [8, 8], strides = [1, 1]} : vector<8x64xf32> to vector<8x8xf32>
    %22 = vector.extract_strided_slice %20 {offsets = [0, 8], sizes = [8, 8], strides = [1, 1]} : vector<8x64xf32> to vector<8x8xf32>
    %23 = vector.extract_strided_slice %20 {offsets = [0, 16], sizes = [8, 8], strides = [1, 1]} : vector<8x64xf32> to vector<8x8xf32>
    %24 = vector.extract_strided_slice %20 {offsets = [0, 24], sizes = [8, 8], strides = [1, 1]} : vector<8x64xf32> to vector<8x8xf32>
    %25 = vector.extract_strided_slice %20 {offsets = [0, 32], sizes = [8, 8], strides = [1, 1]} : vector<8x64xf32> to vector<8x8xf32>
    %26 = vector.extract_strided_slice %20 {offsets = [0, 40], sizes = [8, 8], strides = [1, 1]} : vector<8x64xf32> to vector<8x8xf32>
    %27 = vector.extract_strided_slice %20 {offsets = [0, 48], sizes = [8, 8], strides = [1, 1]} : vector<8x64xf32> to vector<8x8xf32>
    %28 = vector.extract_strided_slice %20 {offsets = [0, 56], sizes = [8, 8], strides = [1, 1]} : vector<8x64xf32> to vector<8x8xf32>
    %29 = tpu.concatenate %21, %22, %23, %24, %25, %26, %27, %28 in 0 : vector<8x8xf32>, vector<8x8xf32>, vector<8x8xf32>, vector<8x8xf32>, vector<8x8xf32>, vector<8x8xf32>, vector<8x8xf32>, vector<8x8xf32> -> vector<64x8xf32>
    %c0_7 = arith.constant 0 : index
    %c0_8 = arith.constant 0 : index
    %30 = vector.load %arg12[%c0_7, %c0_8] : memref<64x8xf32, #tpu.memory_space<vmem>>, vector<64x8xf32>
    %cst_9 = arith.constant dense<0.000000e+00> : vector<64x64xf32>
    %31 = tpu.matmul %30, %19, %cst_9 {dimension_numbers = #tpu.dot_dimension_numbers<[1], [1], [0], [0], [0, 0, 1, 0], [], []>} : vector<64x8xf32>, vector<64x8xf32>, vector<64x64xf32> -> vector<64x64xf32>
    %c0_10 = arith.constant 0 : index
    %c0_11 = arith.constant 0 : index
    %32 = vector.load %arg13[%c0_10, %c0_11] : memref<64x1xf32, #tpu.memory_space<vmem>>, vector<64x1xf32>
    %cst_12 = arith.constant dense<0xFF800000> : vector<64xf32>
    %33 = vector.multi_reduction <maximumf>, %31, %cst_12 [1] : vector<64x64xf32> to vector<64xf32>
    %34 = vector.shape_cast %33 : vector<64xf32> to vector<64x1xf32>
    %35 = arith.maximumf %32, %34 : vector<64x1xf32>
    %36 = arith.subf %32, %35 : vector<64x1xf32>
    %37 = math.exp %36 : vector<64x1xf32>
    %38 = vector.broadcast %35 : vector<64x1xf32> to vector<64x64xf32>
    %39 = arith.subf %31, %38 : vector<64x64xf32>
    %40 = math.exp %39 : vector<64x64xf32>
    %c0_13 = arith.constant 0 : index
    %c0_14 = arith.constant 0 : index
    %41 = vector.load %arg14[%c0_13, %c0_14] : memref<64x1xf32, #tpu.memory_space<vmem>>, vector<64x1xf32>
    %42 = arith.mulf %37, %41 : vector<64x1xf32>
    %cst_15 = arith.constant dense<0.000000e+00> : vector<64xf32>
    %43 = vector.multi_reduction <add>, %40, %cst_15 [1] : vector<64x64xf32> to vector<64xf32>
    %44 = vector.shape_cast %43 : vector<64xf32> to vector<64x1xf32>
    %45 = arith.addf %42, %44 : vector<64x1xf32>
    %c0_16 = arith.constant 0 : index
    %c0_17 = arith.constant 0 : index
    %46 = vector.load %arg14[%c0_16, %c0_17] : memref<64x1xf32, #tpu.memory_space<vmem>>, vector<64x1xf32>
    tpu.vector_store %arg14[%c0_16, %c0_17], %45 {strides = array<i32>} : memref<64x1xf32, #tpu.memory_space<vmem>>, vector<64x1xf32>,
    %c0_18 = arith.constant 0 : index
    %c0_19 = arith.constant 0 : index
    %47 = vector.load %arg15[%c0_18, %c0_19] : memref<64x8xf32, #tpu.memory_space<vmem>>, vector<64x8xf32>
    %48 = vector.broadcast %37 : vector<64x1xf32> to vector<64x8xf32>
    %49 = arith.mulf %48, %47 : vector<64x8xf32>
    %cst_20 = arith.constant dense<0.000000e+00> : vector<64x8xf32>
    %50 = tpu.matmul %40, %29, %cst_20 {dimension_numbers = #tpu.dot_dimension_numbers<[1], [0], [0], [1], [0, 0, 1, 1], [], []>} : vector<64x64xf32>, vector<64x8xf32>, vector<64x8xf32> -> vector<64x8xf32>
    %51 = arith.addf %49, %50 : vector<64x8xf32>
    %c0_21 = arith.constant 0 : index
    %c0_22 = arith.constant 0 : index
    %52 = vector.load %arg15[%c0_21, %c0_22] : memref<64x8xf32, #tpu.memory_space<vmem>>, vector<64x8xf32>
    tpu.vector_store %arg15[%c0_21, %c0_22], %51 {strides = array<i32>} : memref<64x8xf32, #tpu.memory_space<vmem>>, vector<64x8xf32>,
    %c0_23 = arith.constant 0 : index
    %c0_24 = arith.constant 0 : index
    %53 = vector.load %arg13[%c0_23, %c0_24] : memref<64x1xf32, #tpu.memory_space<vmem>>, vector<64x1xf32>
    tpu.vector_store %arg13[%c0_23, %c0_24], %35 {strides = array<i32>} : memref<64x1xf32, #tpu.memory_space<vmem>>, vector<64x1xf32>,
    %c1_i32 = arith.constant 1 : i32
    %54 = arith.cmpi eq, %arg2, %c1_i32 : i32
    %55 = arith.extui %54 : i1 to i32
    %c0_i32_25 = arith.constant 0 : i32
    %56 = arith.cmpi ne, %55, %c0_i32_25 : i32
    scf.if %56 {
      %c0_26 = arith.constant 0 : index
      %c0_27 = arith.constant 0 : index
      %57 = vector.load %arg15[%c0_26, %c0_27] : memref<64x8xf32, #tpu.memory_space<vmem>>, vector<64x8xf32>
      %c0_28 = arith.constant 0 : index
      %c0_29 = arith.constant 0 : index
      %58 = vector.load %arg14[%c0_28, %c0_29] : memref<64x1xf32, #tpu.memory_space<vmem>>, vector<64x1xf32>
      %cst_30 = arith.constant 1.000000e+00 : f32
      %59 = vector.broadcast %cst_30 : f32 to vector<64x1xf32>
      %60 = arith.divf %59, %58 : vector<64x1xf32>
      %61 = vector.broadcast %60 : vector<64x1xf32> to vector<64x8xf32>
      %62 = arith.mulf %57, %61 : vector<64x8xf32>
      %63 = vector.extract_strided_slice %62 {offsets = [0, 0], sizes = [8, 8], strides = [1, 1]} : vector<64x8xf32> to vector<8x8xf32>
      %64 = vector.extract_strided_slice %62 {offsets = [8, 0], sizes = [8, 8], strides = [1, 1]} : vector<64x8xf32> to vector<8x8xf32>
      %65 = vector.extract_strided_slice %62 {offsets = [16, 0], sizes = [8, 8], strides = [1, 1]} : vector<64x8xf32> to vector<8x8xf32>
      %66 = vector.extract_strided_slice %62 {offsets = [24, 0], sizes = [8, 8], strides = [1, 1]} : vector<64x8xf32> to vector<8x8xf32>
      %67 = vector.extract_strided_slice %62 {offsets = [32, 0], sizes = [8, 8], strides = [1, 1]} : vector<64x8xf32> to vector<8x8xf32>
      %68 = vector.extract_strided_slice %62 {offsets = [40, 0], sizes = [8, 8], strides = [1, 1]} : vector<64x8xf32> to vector<8x8xf32>
      %69 = vector.extract_strided_slice %62 {offsets = [48, 0], sizes = [8, 8], strides = [1, 1]} : vector<64x8xf32> to vector<8x8xf32>
      %70 = vector.extract_strided_slice %62 {offsets = [56, 0], sizes = [8, 8], strides = [1, 1]} : vector<64x8xf32> to vector<8x8xf32>
      %71 = tpu.concatenate %63, %64, %65, %66, %67, %68, %69, %70 in 1 : vector<8x8xf32>, vector<8x8xf32>, vector<8x8xf32>, vector<8x8xf32>, vector<8x8xf32>, vector<8x8xf32>, vector<8x8xf32>, vector<8x8xf32> -> vector<8x64xf32>
      %c0_31 = arith.constant 0 : index
      %c0_32 = arith.constant 0 : index
      %72 = vector.load %arg9[%c0_31, %c0_32] : memref<64x64xf32, #tpu.memory_space<vmem>>, vector<64x64xf32>
      %cst_33 = arith.constant dense<0.000000e+00> : vector<8x64xf32>
      %73 = tpu.matmul %71, %72, %cst_33 {dimension_numbers = #tpu.dot_dimension_numbers<[1], [0], [0], [1], [0, 0, 1, 1], [], []>} : vector<8x64xf32>, vector<64x64xf32>, vector<8x64xf32> -> vector<8x64xf32>
      %c0_34 = arith.constant 0 : index
      %c0_35 = arith.constant 0 : index
      %74 = vector.load %arg10[%c0_34, %c0_35] : memref<1x64xf32, #tpu.memory_space<vmem>>, vector<1x64xf32>
      %75 = vector.broadcast %74 : vector<1x64xf32> to vector<8x64xf32>
      %76 = arith.addf %73, %75 : vector<8x64xf32>
      %c0_36 = arith.constant 0 : index
      %c0_37 = arith.constant 0 : index
      %c0_38 = arith.constant 0 : index
      %77 = vector.load %arg11[%c0_36, %c0_37, %c0_38] : memref<1x8x64xf32, #tpu.memory_space<vmem>>, vector<1x8x64xf32>
      %78 = vector.shape_cast %77 : vector<1x8x64xf32> to vector<8x64xf32>
      %79 = vector.shape_cast %76 : vector<8x64xf32> to vector<1x8x64xf32>
      tpu.vector_store %arg11[%c0_36, %c0_37, %c0_38], %79 {strides = array<i32>} : memref<1x8x64xf32, #tpu.memory_space<vmem>>, vector<1x8x64xf32>,
    } else {
    }
    return
  }
  func.func @transform_0(%arg0: i32, %arg1: i32, %arg2: i32) -> (i32, i32, i32) {
    %c0_i32 = arith.constant 0 : i32
    %c0_i32_0 = arith.constant 0 : i32
    return %arg0, %arg1, %c0_i32 : i32, i32, i32
  }
  func.func @transform_1(%arg0: i32, %arg1: i32, %arg2: i32) -> (i32, i32, i32) {
    %c2_i32 = arith.constant 2 : i32
    %0 = arith.muli %arg1, %c2_i32 : i32
    %1 = arith.addi %0, %arg2 : i32
    %c0_i32 = arith.constant 0 : i32
    %c0_i32_0 = arith.constant 0 : i32
    return %arg0, %1, %c0_i32 : i32, i32, i32
  }
  func.func @transform_2(%arg0: i32, %arg1: i32, %arg2: i32) -> (i32, i32) {
    %c0_i32 = arith.constant 0 : i32
    %c0_i32_0 = arith.constant 0 : i32
    %c0_i32_1 = arith.constant 0 : i32
    return %c0_i32, %c0_i32_0 : i32, i32
  }
  func.func @transform_3(%arg0: i32, %arg1: i32, %arg2: i32) -> (i32, i32) {
    %c0_i32 = arith.constant 0 : i32
    %c0_i32_0 = arith.constant 0 : i32
    %c0_i32_1 = arith.constant 0 : i32
    return %c0_i32, %c0_i32_0 : i32, i32
  }
  func.func @transform_4(%arg0: i32, %arg1: i32, %arg2: i32) -> (i32, i32) {
    %c0_i32 = arith.constant 0 : i32
    %c0_i32_0 = arith.constant 0 : i32
    %c0_i32_1 = arith.constant 0 : i32
    return %c0_i32, %c0_i32_0 : i32, i32
  }
  func.func @transform_5(%arg0: i32, %arg1: i32, %arg2: i32) -> (i32, i32) {
    %c0_i32 = arith.constant 0 : i32
    %c0_i32_0 = arith.constant 0 : i32
    %c0_i32_1 = arith.constant 0 : i32
    return %c0_i32, %c0_i32_0 : i32, i32
  }
  func.func @transform_6(%arg0: i32, %arg1: i32, %arg2: i32) -> (i32, i32) {
    %c0_i32 = arith.constant 0 : i32
    %c0_i32_0 = arith.constant 0 : i32
    %c0_i32_1 = arith.constant 0 : i32
    return %c0_i32, %c0_i32_0 : i32, i32
  }
  func.func @transform_7(%arg0: i32, %arg1: i32, %arg2: i32) -> (i32, i32) {
    %c0_i32 = arith.constant 0 : i32
    %c0_i32_0 = arith.constant 0 : i32
    %c0_i32_1 = arith.constant 0 : i32
    return %c0_i32, %c0_i32_0 : i32, i32
  }
  func.func @transform_8(%arg0: i32, %arg1: i32, %arg2: i32) -> (i32, i32, i32) {
    %c0_i32 = arith.constant 0 : i32
    %c0_i32_0 = arith.constant 0 : i32
    return %arg0, %arg1, %c0_i32 : i32, i32, i32
  }
}

</mosaic_0001>

<bundles_post_ra>
// kernel: cross_attention_forward.1
= control target key start
LH: loop header
LB: loop body
LE: loop exit
PB: predicated region body
PF: predicated region fallthrough
CT: control target
= control target key end

     0   :  { %s2423_s0 = inlined_call_operand.vmem [shape: f32[2,64,64], index: 0, kind: input, shape index: {}]   ;;  %s2424_s1 = inlined_call_operand.vmem [shape: f32[2,128,64], index: 1, kind: input, shape index: {}]   ;;  %s2425_s2 = inlined_call_operand.vmem [shape: f32[64,64], index: 2, kind: input, shape index: {}]   ;;  %s2426_s3 = inlined_call_operand.vmem [shape: f32[1,64], index: 3, kind: input, shape index: {}]   ;;  %s2427_s4 = inlined_call_operand.vmem [shape: f32[64,128], index: 4, kind: input, shape index: {}]   ;;  %s2428_s5 = inlined_call_operand.vmem [shape: f32[1,128], index: 5, kind: input, shape index: {}]   ;;  %s2429_s6 = inlined_call_operand.vmem [shape: f32[64,64], index: 6, kind: input, shape index: {}]   ;;  %s2430_s7 = inlined_call_operand.vmem [shape: f32[1,64], index: 7, kind: input, shape index: {}]   ;;  %s2431_s8 = inlined_call_operand.hbm [shape: f32[2,64,64], index: 8, kind: output, shape index: {}]  }
   0x1   :  { %2444 = sst [smem:[#allocation20_spill]] %s2431_s8 }
   0x2   :  { %13 = vsyncpa [#allocation7], 0 }
   0x3   :  { %15 = vsyncpa [#allocation7 + $0x1], 0  ;;  %s1795_s27 = smov 0   ;;  %s1797_s28 = smov 0  }
   0x4   :  { %s1799_s29 = smov 0   ;;  %s1801_s30 = smov 0  }
   0x5   :  { %s1803_s9 = smov 0   ;;  %s1805_s10 = smov 0  }
   0x6   :  { %s1807_s11 = smov 0   ;;  %s1809_s12 = smov 0  }
   0x7   :  { %s1811_s13 = smov 0   ;;  %s1813_s14 = smov 0  }
   0x8 LB: > { %2445 = sst [smem:[#allocation9_spill]] %s1686_s27  ;;  %s1359_s15 = sadd.s32 4294967295, %s1722_s14   ;;  %s1722_s14 = sphi %s1813_s14, %s21_s14   ;;  %s1718_s13 = sphi %s1811_s13, %s2492_s13   ;;  %s1714_s12 = sphi %s1809_s12, %s2491_s12   ;;  %s1710_s11 = sphi %s1807_s11, %s2490_s11   ;;  %s1706_s10 = sphi %s1805_s10, %s2489_s10   ;;  %s1702_s9 = sphi %s1803_s9, %s2488_s9   ;;  %s1698_s30 = sphi %s1801_s30, %s2487_s30   ;;  %s1694_s29 = sphi %s1799_s29, %s2486_s29   ;;  %s1690_s28 = sphi %s1797_s28, %s2494_s28   ;;  %s1686_s27 = sphi %s1795_s27, %s2493_s27  }
   0x9   : > { %2446 = sst [smem:[#allocation10_spill]] %s1694_s29  ;;  %s1360_s16 = sadd.s32 4294967294, %s1722_s14  }
   0xa   : > { %2447 = sst [smem:[#allocation11_spill]] %s1710_s11  ;;  %s33_s17 = sadd.s32 1, %s1710_s11 }
   0xb   : > { %2448 = sst [smem:[#allocation12_spill]] %s1714_s12  ;;  %p34_p0 = scmp.ge.s32.totalorder %s33_s17, 2 }
   0xc   : > { %2449 = sst [smem:[#allocation13_spill]] %s1718_s13  ;;  %s36_s18 = sadd.s32 1, %s1714_s12 }
   0xd   : > { %2450 = sst [smem:[#allocation14_spill]] %s1722_s14  ;;  %s40_s19 = sadd.s32 1, %s1718_s13 }
   0xe   : > { %p245_p1 = scmp.ne.s32.totalorder %s1694_s29, %s1690_s28  ;;  %s2496_s17 = smov (%p34_p0, %s33_s17), 0 }
   0xf   : > { %2451 = sst [smem:[#allocation15_spill]] %s2496_s17  ;;  %s2498_s18 = smov (!%p34_p0, %s36_s18), %s1714_s12 }
  0x10   : > { %p246_p2 = scmp.eq.s32.totalorder %s1359_s15, 31  ;;  %p251_p3 = scmp.ne.s32.totalorder %s1690_s28, %s1686_s27 }
  0x11   : > { %p38_p4 = scmp.ge.s32.totalorder %s2498_s18, 8  ;;  %p252_p5 = scmp.eq.s32.totalorder %s1360_s16, 31 }
  0x12   : > { %p1857_p6 = por %p246_p2, %p245_p1  ;;  %p1365_p8 = scmp.ge.s32.totalorder %s1722_s14, 1 }
  0x13   : > { %s2500_s18 = smov (%p38_p4, %s2498_s18), 0  ;;  %s2502_s19 = smov (!%p38_p4, %s40_s19), %s1718_s13 }
  0x14   : > { %2453 = sst [smem:[#allocation16_spill]] %s2500_s18  ;;  %p1864_p7 = por %p252_p5, %p251_p3 }
  0x15   : > { %p42_p9 = scmp.ge.s32.totalorder %s2502_s19, 2  ;;  %p314_p10 = scmp.lt.s32.totalorder %s1722_s14, 33 }
  0x16   : > { %s2454_s21 = scalar_select %p1864_p7, 1, 0 }
  0x17   : > { %s231_s22 = ssub.s32 %s1714_s12, %s2500_s18  ;;  %s2504_s19 = smov (%p42_p9, %s2502_s19), 0 }
  0x18   : > { %2455 = sst [smem:[#allocation17_spill]] %s2454_s21  ;;  %p315_p11 = pnand %p1365_p8, %p314_p10 }
  0x19   : > { %2456 = sst [smem:[#allocation18_spill]] %s2504_s19  ;;  %s230_s23 = ssub.s32 %s1718_s13, %s2504_s19 }
  0x1a   : > { %s232_s24 = sor.u32 %s231_s22, %s230_s23  ;;  %s235_s25 = sadd.s32 1, %s1694_s29 }
  0x1b   : > { %p233_p12 = scmp.eq.s32.totalorder %s232_s24, 0  ;;  %318 = sbr.rel (%p315_p11) target bundleno = 1649 (0x671), region = 52 }
  0x1c   : > { %s2439_s15 = sand.u32 (!%p315_p11), 1, %s1690_s28   ;;  %p361_p13 = scmp.lt.s32.totalorder (!%p315_p11), %s1706_s10, 1 }
  0x1d   : > { %s1878_s26 = scalar_select %p233_p12, %s1694_s29, %s235_s25  }
  0x1e   : > { %s1884_s16 = sshll.u32 (!%p315_p11), %s2439_s15, 3  ;;  %p363_p0 = scmp.lt.s32.totalorder (!%p315_p11), %s1702_s9, 7 }
  0x1f   : > { %2457 = sst [smem:[#allocation19_spill]] %s1878_s26  ;;  %s1369_s22 = sshll.u32 (!%p315_p11), %s1702_s9, 1 }
  0x20   : > { %s362_s23 = scalar_select %p361_p13, %s1706_s10, 1 }
  0x21   : > { %s364_s24 = scalar_select %p363_p0, %s1702_s9, 7 }
  0x22   : > { %s1367_s25 = sshll.u32 %s362_s23, 3  ;;  %s370_s19 = sadd.s32 %s1698_s30, %s1369_s22 }
  0x23   : > { %s366_s18 = sadd.s32 %s1367_s25, %s364_s24  ;;  %p373_p1 = scmp.lt.s32.totalorder %s370_s19, 15 }
  0x24   : > { %s1368_s17 = sshll.u32 %s366_s18, 3  ;;  %s1370_s26 = sshll.u32 %s362_s23, 4 }
  0x25   : > { %s368_s11 = scalar_lea.vmem %s2423_s0, %s1368_s17  ;;  %s2506_s19 = smov (!%p373_p1, %s370_s19), 15 }
  0x26   : > { %s376_s29 = sadd.s32 %s1370_s26, %s2506_s19  ;;  %s360_s8 = scalar_lea.vmem [#allocation6], %s1884_s16 }
  0x27   : > { %s1371_s21 = sshll.u32 %s376_s29, 3  ;;  %p1372_p2 = scmp.ne.s32.totalorder %s1698_s30, 0 }
  0x28   : > { %s1897_s14 = scalar_lea.vmem %s2424_s1, %s1371_s21  ;;  %s1726_s12 = smov (!%p1372_p2), 88  }
  0x29   : > { %384 = sbr.rel (%p1372_p2) target bundleno = 323 (0x143), region = 56  ;;  %s1727_s13 = smov (!%p1372_p2), 104  }
  0x2a   : > { %s1728_s29 = smov (!%p1372_p2), 120   ;;  %s1729_s27 = smov (!%p1372_p2), 80  }
  0x2b   : > { %s1730_s17 = smov (!%p1372_p2), 96   ;;  %s1731_s19 = smov (!%p1372_p2), 112  }
  0x2c   : > { %s1732_s21 = smov (!%p1372_p2), 72  }
  0x2e   : > { %v393_v0 = vld [vmem:[%s2425_s2 + $0x38] sm:$0xff]  ;;  %v392_v1 = vld [vmem:[%s2425_s2 + $0x30] sm:$0xff]  ;;  %v391_v2 = vld [vmem:[%s2425_s2 + $0x28] sm:$0xff]  ;;  %vm398_vm0 = vcmask 523264   ;;  %vm453_vm1 = vcmask 7168   ;;  %v1724_v9 = vmov -inf  }
  0x2f   : > { %410 = vmatpush.msra.mxu0 %v393_v0  ;;  %v390_v3 = vld [vmem:[%s2425_s2 + $0x20] sm:$0xff]  ;;  %v389_v4 = vld [vmem:[%s2425_s2 + $0x18] sm:$0xff]  ;;  %v388_v5 = vld [vmem:[%s2425_s2 + $0x10] sm:$0xff]  ;;  %454 = vst.msk [vmem:[#allocation3] sm:$0xff] %vm453_vm1, %v1724_v9  ;;  %v1725_v10 = vmov 0.0   ;;  %vm444_vm2 = vcmask 64512  }
  0x30   : > { %v387_v6 = vld [vmem:[%s2425_s2 + $0x8] sm:$0xff]  ;;  %v386_v7 = vld [vmem:[%s2425_s2] sm:$0xff]  ;;  %455 = vst.msk [vmem:[#allocation3 + $0x8] sm:$0xff] %vm453_vm1, %v1724_v9 }
  0x31   : > { %411 = vmatpush.msra.mxu0 %v392_v1  ;;  %v385_v8 = vld [vmem:[%s368_s11] sm:$0xff]  ;;  %456 = vst.msk [vmem:[#allocation3 + $0x10] sm:$0xff] %vm453_vm1, %v1724_v9 }
  0x32   : > { %457 = vst.msk [vmem:[#allocation3 + $0x18] sm:$0xff] %vm453_vm1, %v1724_v9  ;;  %v1535_v11 = vld [vmem:[%s2426_s3] ss:$0 sm:$0xff] }
  0x33   : > { %412 = vmatpush.msra.mxu0 %v391_v2  ;;  %458 = vst.msk [vmem:[#allocation3 + $0x20] sm:$0xff] %vm453_vm1, %v1724_v9 }
  0x34   : > { %459 = vst.msk [vmem:[#allocation3 + $0x28] sm:$0xff] %vm453_vm1, %v1724_v9 }
  0x35   : > { %413 = vmatpush.msra.mxu0 %v390_v3  ;;  %460 = vst.msk [vmem:[#allocation3 + $0x30] sm:$0xff] %vm453_vm1, %v1724_v9 }
  0x36   : > { %461 = vst.msk [vmem:[#allocation3 + $0x38] sm:$0xff] %vm453_vm1, %v1724_v9 }
  0x37   : > { %414 = vmatpush.msra.mxu0 %v389_v4  ;;  %462 = vst.msk [vmem:[#allocation4] sm:$0xff] %vm453_vm1, %v1725_v10 }
  0x38   : > { %463 = vst.msk [vmem:[#allocation4 + $0x8] sm:$0xff] %vm453_vm1, %v1725_v10 }
  0x39   : > { %415 = vmatpush.msra.mxu0 %v388_v5  ;;  %464 = vst.msk [vmem:[#allocation4 + $0x10] sm:$0xff] %vm453_vm1, %v1725_v10 }
  0x3a   : > { %465 = vst.msk [vmem:[#allocation4 + $0x18] sm:$0xff] %vm453_vm1, %v1725_v10 }
  0x3b   : > { %416 = vmatpush.msra.mxu0 %v387_v6  ;;  %466 = vst.msk [vmem:[#allocation4 + $0x20] sm:$0xff] %vm453_vm1, %v1725_v10 }
  0x3c   : > { %467 = vst.msk [vmem:[#allocation4 + $0x28] sm:$0xff] %vm453_vm1, %v1725_v10 }
  0x3d   : > { %417 = vmatpush.msra.mxu0 %v386_v7  ;;  %468 = vst.msk [vmem:[#allocation4 + $0x30] sm:$0xff] %vm453_vm1, %v1725_v10 }
  0x3e   : > { %1373 = vmatmul.msk.f32.vlgmr.msra.gmra.mxu0 %vm398_vm0, %v385_v8  ;;  %469 = vst.msk [vmem:[#allocation4 + $0x38] sm:$0xff] %vm453_vm1, %v1725_v10 }
  0x3f   : > { %470 = vst.msk [vmem:[#allocation5] sm:$0xff] %vm444_vm2, %v1725_v10 }
  0x40   : > { %471 = vst.msk [vmem:[#allocation5 + $0x8] sm:$0xff] %vm444_vm2, %v1725_v10 }
  0x41   : > { %472 = vst.msk [vmem:[#allocation5 + $0x10] sm:$0xff] %vm444_vm2, %v1725_v10 }
  0x42   : > { %473 = vst.msk [vmem:[#allocation5 + $0x18] sm:$0xff] %vm444_vm2, %v1725_v10 }
  0x43   : > { %474 = vst.msk [vmem:[#allocation5 + $0x20] sm:$0xff] %vm444_vm2, %v1725_v10 }
  0x44   : > { %475 = vst.msk [vmem:[#allocation5 + $0x28] sm:$0xff] %vm444_vm2, %v1725_v10 }
  0x45   : > { %476 = vst.msk [vmem:[#allocation5 + $0x30] sm:$0xff] %vm444_vm2, %v1725_v10 }
  0x46   : > { %477 = vst.msk [vmem:[#allocation5 + $0x38] sm:$0xff] %vm444_vm2, %v1725_v10 }
  0xbb   : > { %v419_v12 = vpop.f32.mrf.mxu0 }
  0xbc   : > { %v420_v13 = vadd.f32 %v1535_v11, %v419_v12 }
  0xbe   : > { %445 = vst.msk [vmem:[#allocation2] sm:$0xff] %vm444_vm2, %v420_v13  ;;  %435 = vrot.lane.b32.xlu2 %v420_v13, %s1726_s12  ;;  %429 = vrot.lane.b32.xlu1 %v420_v13, %s1727_s13 }
  0xbf   : > { %423 = vrot.lane.b32.xlu0 %v420_v13, %s1728_s29 }
  0xc6   : > { %438 = vrot.lane.b32.xlu2 %v420_v13, %s1729_s27  ;;  %432 = vrot.lane.b32.xlu1 %v420_v13, %s1730_s17 }
  0xc7   : > { %426 = vrot.lane.b32.xlu0 %v420_v13, %s1731_s19 }
  0xcf   : > { %441 = vrot.lane.b32.xlu0 %v420_v13, %s1732_s21 }
 0x118   : > { %v436_v14 = vpop.permute.xlu2 %435 }
 0x119   : > { %450 = vst.msk [vmem:[#allocation2 + $0x28] sm:$0xff] %vm444_vm2, %v436_v14 }
 0x120   : > { %v439_v15 = vpop.permute.xlu2 %438 }
 0x121   : > { %451 = vst.msk [vmem:[#allocation2 + $0x30] sm:$0xff] %vm444_vm2, %v439_v15 }
 0x130   : > { %v430_v16 = vpop.permute.xlu1 %429 }
 0x131   : > { %448 = vst.msk [vmem:[#allocation2 + $0x18] sm:$0xff] %vm444_vm2, %v430_v16  ;;  %v424_v17 = vpop.permute.xlu0 %423 }
 0x132   : > { %446 = vst.msk [vmem:[#allocation2 + $0x8] sm:$0xff] %vm444_vm2, %v424_v17 }
 0x138   : > { %v433_v18 = vpop.permute.xlu1 %432 }
 0x139   : > { %449 = vst.msk [vmem:[#allocation2 + $0x20] sm:$0xff] %vm444_vm2, %v433_v18  ;;  %v427_v19 = vpop.permute.xlu0 %426 }
 0x13a   : > { %447 = vst.msk [vmem:[#allocation2 + $0x10] sm:$0xff] %vm444_vm2, %v427_v19 }
 0x141   : > { %v442_v20 = vpop.permute.xlu0 %441 }
 0x142   : > { %452 = vst.msk [vmem:[#allocation2 + $0x38] sm:$0xff] %vm444_vm2, %v442_v20 }
 0x143 PF: > { %v486_v21 = vld [vmem:[%s2427_s4 + $0x38] sm:$0xff]  ;;  %v485_v22 = vld [vmem:[%s2427_s4 + $0x30] sm:$0xff]  ;;  %v484_v23 = vld [vmem:[%s2427_s4 + $0x28] sm:$0xff]  ;;  %vm491_vm3 = vcmask 523264   ;;  %s1733_s25 = smov 104   ;;  %s1734_s22 = smov 88  }
 0x144   : > { %503 = vmatpush.msra.mxu0 %v486_v21  ;;  %v483_v24 = vld [vmem:[%s2427_s4 + $0x20] sm:$0xff]  ;;  %v482_v25 = vld [vmem:[%s2427_s4 + $0x18] sm:$0xff]  ;;  %v481_v26 = vld [vmem:[%s2427_s4 + $0x10] sm:$0xff]  ;;  %s1735_s24 = smov 72   ;;  %s1737_s11 = smov 96   ;;  %vm538_vm4 = vcmask 64512  }
 0x145   : > { %v480_v27 = vld [vmem:[%s2427_s4 + $0x8] sm:$0xff]  ;;  %v479_v28 = vld [vmem:[%s2427_s4] sm:$0xff]  ;;  %s1738_s18 = smov 80   ;;  %s1739_s12 = smov 120   ;;  %v532_v46 = vld [vmem:[#allocation2 + $0x10] sm:$0xff]  ;;  %v1741_v3 = vmov 0  }
 0x146   : > { %504 = vmatpush.msra.mxu0 %v485_v22  ;;  %v478_v29 = vld [vmem:[%s1897_s14] sm:$0xff]  ;;  %s1736_s14 = smov 112   ;;  %s1740_s13 = smov 64   ;;  %v531_v44 = vld [vmem:[#allocation2 + $0x8] sm:$0xff]  ;;  %v536_v47 = vld [vmem:[#allocation2 + $0x30] sm:$0xff]  ;;  %1551 = vset.pattern.permute.xlu2 %v1741_v3  ;;  %vm796_vm5 = vcmask 7168  }
 0x147   : > { %v1559_v30 = vld [vmem:[%s2428_s5] ss:$0 sm:$0xff]  ;;  %v535_v45 = vld [vmem:[#allocation2 + $0x28] sm:$0xff]  ;;  %v533_v48 = vld [vmem:[#allocation2 + $0x18] sm:$0xff]  ;;  %1558 = vset.pattern.permute.xlu0 %v1741_v3  ;;  %1557 = vset.pattern.permute.xlu1 %v1741_v3  ;;  %p1399_p3 = scmp.ne.s32.totalorder %s1698_s30, 1 }
 0x148   : > { %505 = vmatpush.msra.mxu0 %v484_v23  ;;  %v530_v42 = vld [vmem:[#allocation2] sm:$0xff]  ;;  %v2077_v11 = vld [vmem:[#allocation3 + $0x10] sm:$0xff]  ;;  %s1743_s30 = smov (!%p1399_p3), 24   ;;  %s1744_s29 = smov (!%p1399_p3), 8  }
 0x149   : > { %v534_v43 = vld [vmem:[#allocation2 + $0x20] sm:$0xff]  ;;  %v537_v49 = vld [vmem:[#allocation2 + $0x38] sm:$0xff]  ;;  %s1745_s27 = smov (!%p1399_p3), 48   ;;  %s1746_s17 = smov (!%p1399_p3), 16  }
 0x14a   : > { %506 = vmatpush.msra.mxu0 %v483_v24  ;;  %v2063_v4 = vld [vmem:[#allocation3] sm:$0xff]  ;;  %v626_v24 = vld [vmem:[#allocation3 + $0x30] sm:$0xff]  ;;  %s1747_s19 = smov (!%p1399_p3), 32   ;;  %s1748_s21 = smov (!%p1399_p3), 40  }
 0x14b   : > { %v2070_v7 = vld [vmem:[#allocation3 + $0x20] sm:$0xff]  ;;  %s1749_s26 = smov (!%p1399_p3), 56  }
 0x14c   : > { %507 = vmatpush.msra.mxu0 %v482_v25 }
 0x14e   : > { %508 = vmatpush.msra.mxu0 %v481_v26 }
 0x150   : > { %509 = vmatpush.msra.mxu0 %v480_v27  ;;  %v2091_v27 = vld [vmem:[#allocation3 + $0x38] sm:$0xff] }
 0x152   : > { %510 = vmatpush.msra.mxu0 %v479_v28  ;;  %v625_v28 = vld [vmem:[#allocation3 + $0x28] sm:$0xff] }
 0x153   : > { %1374 = vmatmul.msk.f32.vlgmr.msra.gmra.mxu0 %vm491_vm3, %v478_v29 }
 0x1d0   : > { %v512_v31 = vpop.f32.mrf.mxu0 }
 0x1d1   : > { %v1989_v32 = vadd.f32 %v1559_v30, %v512_v31 }
 0x1d3   : > { %520 = vrot.lane.b32.xlu2 %v1989_v32, %s1733_s25  ;;  %524 = vrot.lane.b32.xlu1 %v1989_v32, %s1734_s22 }
 0x1d4   : > { %528 = vrot.lane.b32.xlu0 %v1989_v32, %s1735_s24 }
 0x1db   : > { %518 = vrot.lane.b32.xlu2 %v1989_v32, %s1736_s14  ;;  %522 = vrot.lane.b32.xlu1 %v1989_v32, %s1737_s11 }
 0x1dc   : > { %526 = vrot.lane.b32.xlu0 %v1989_v32, %s1738_s18 }
 0x1e4   : > { %516 = vrot.lane.b32.xlu0 %v1989_v32, %s1739_s12 }
 0x22d   : > { %v521_v39 = vpop.permute.xlu2 %520 }
 0x235   : > { %v519_v40 = vpop.permute.xlu2 %518 }
 0x236   : > { %v1546_v57 = vpack.i.bf16 %v519_v40, %v521_v39 }
 0x245   : > { %v525_v33 = vpop.permute.xlu1 %524 }
 0x246   : > { %v529_v34 = vpop.permute.xlu0 %528 }
 0x247   : > { %1375 = vmatpush.xpose.msk.msra.mxu1 %vm538_vm4, %v529_v34  ;;  %1406 = vmatpush.xpose.msk.msra.mxu3 %vm538_vm4, %v529_v34 }
 0x24d   : > { %v523_v35 = vpop.permute.xlu1 %522 }
 0x24e   : > { %v1541_v36 = vpack.i.bf16 %v523_v35, %v525_v33  ;;  %v527_v37 = vpop.permute.xlu0 %526 }
 0x24f   : > { %v1536_v38 = vpack.i.bf16 %v527_v37, %v529_v34  ;;  %1376 = vmatpush.xpose.msk.msra.mxu1 %vm538_vm4, %v527_v37  ;;  %1407 = vmatpush.xpose.msk.msra.mxu3 %vm538_vm4, %v527_v37 }
 0x250   : > { %1542 = vrot.lane.b32.xlu1 %v1541_v36, %s1740_s13 }
 0x253   : > { %1377 = vmatpush.xpose.msk.msra.mxu1 %vm538_vm4, %v525_v33  ;;  %1408 = vmatpush.xpose.msk.msra.mxu3 %vm538_vm4, %v525_v33  ;;  %v621_v33 = vld [vmem:[#allocation3 + $0x8] sm:$0xff] }
 0x256   : > { %v2011_v41 = vpop.permute.xlu0 %516 }
 0x257   : > { %1378 = vmatpush.xpose.msk.msra.mxu1 %vm538_vm4, %v523_v35  ;;  %1409 = vmatpush.xpose.msk.msra.mxu3 %vm538_vm4, %v523_v35  ;;  %v1552_v15 = vpack.i.bf16 %v1989_v32, %v2011_v41 }
 0x25b   : > { %1379 = vmatpush.xpose.msk.msra.mxu1 %vm538_vm4, %v521_v39  ;;  %1410 = vmatpush.xpose.msk.msra.mxu3 %vm538_vm4, %v521_v39  ;;  %v623_v39 = vld [vmem:[#allocation3 + $0x18] sm:$0xff] }
 0x25f   : > { %1380 = vmatpush.xpose.msk.msra.mxu1 %vm538_vm4, %v519_v40  ;;  %1411 = vmatpush.xpose.msk.msra.mxu3 %vm538_vm4, %v519_v40 }
 0x263   : > { %1381 = vmatpush.xpose.msk.msra.mxu1 %vm538_vm4, %v2011_v41  ;;  %1412 = vmatpush.xpose.msk.msra.mxu3 %vm538_vm4, %v2011_v41 }
 0x267   : > { %1382 = vmatpush.xpose.msk.msra.mxu1 %vm538_vm4, %v1989_v32  ;;  %1413 = vmatpush.xpose.msk.msra.mxu3 %vm538_vm4, %v1989_v32 }
 0x26a   : > { %1383 = vmatmul.msk.f32.vlgmr.msra.gmra.mxu1 %vm538_vm4, %v530_v42  ;;  %1387 = vmatmul.msk.f32.vlgmr.msra.gmra.mxu3 %vm538_vm4, %v534_v43 }
 0x272   : > { %1384 = vmatmul.msk.f32.gmra.mxu1 %vm538_vm4, %v531_v44  ;;  %1388 = vmatmul.msk.f32.gmra.mxu3 %vm538_vm4, %v535_v45 }
 0x27a   : > { %1385 = vmatmul.msk.f32.gmra.mxu1 %vm538_vm4, %v532_v46  ;;  %1389 = vmatmul.msk.f32.gmra.mxu3 %vm538_vm4, %v536_v47 }
 0x282   : > { %1386 = vmatmul.msk.f32.gmra.mxu1 %vm538_vm4, %v533_v48  ;;  %1390 = vmatmul.msk.f32.gmra.mxu3 %vm538_vm4, %v537_v49 }
 0x2c2   : > { %v1543_v10 = vpop.permute.xlu1 %1542 }
 0x2c3   : > { %v1544_v19 = vunpack.i.l.bf16 %v1543_v10  ;;  %v1545_v21 = vunpack.i.h.bf16 %v1543_v10 }
 0x2e7   : > { %v2029_v50 = vpop.f32.mrf.mxu1 }
 0x2e8   : > { %v628_v51 = vsel %vm491_vm3, %v2029_v50, -inf }
 0x2e9   : > { %629 = vmax.xlane.f32.xlu2 %v628_v51 }
 0x2ed   : > { %v2033_v52 = vpop.f32.mrf.mxu3 }
 0x2ee   : > { %v640_v53 = vsel %vm491_vm3, %v2033_v52, -inf }
 0x2ef   : > { %641 = vmax.xlane.f32.xlu0 %v640_v53  ;;  %v2037_v54 = vpop.f32.mrf.mxu1 }
 0x2f0   : > { %v631_v0 = vsel %vm491_vm3, %v2037_v54, -inf }
 0x2f5   : > { %v2045_v58 = vpop.f32.mrf.mxu3 }
 0x2f6   : > { %v643_v62 = vsel %vm491_vm3, %v2045_v58, -inf }
 0x2f7   : > { %v2039_v55 = vpop.f32.mrf.mxu1 }
 0x2f8   : > { %v634_v56 = vsel %vm491_vm3, %v2039_v55, -inf }
 0x2f9   : > { %635 = vmax.xlane.f32.xlu1 %v634_v56 }
 0x2fd   : > { %v2047_v59 = vpop.f32.mrf.mxu3 }
 0x2fe   : > { %v646_v60 = vsel %vm491_vm3, %v2047_v59, -inf }
 0x2ff   : > { %v2059_v1 = vpop.f32.mrf.mxu1 }
 0x300   : > { %v637_v2 = vsel %vm491_vm3, %v2059_v1, -inf }
 0x301   : > { %1547 = vrot.lane.b32.xlu2 %v1546_v57, %s1740_s13  ;;  %647 = vmax.xlane.f32.xlu1 %v646_v60 }
 0x303   : > { %1537 = vrot.lane.b32.xlu0 %v1536_v38, %s1740_s13 }
 0x305   : > { %v2051_v61 = vpop.f32.mrf.mxu3 }
 0x306   : > { %v649_v63 = vsel %vm491_vm3, %v2051_v61, -inf }
 0x309   : > { %650 = vmax.xlane.f32.xlu1 %v649_v63 }
 0x32a   : > { %644 = vmax.xlane.f32.xlu2 %v643_v62 }
 0x32d   : > { %632 = vmax.xlane.f32.xlu0 %v631_v0 }
 0x332   : > { %638 = vmax.xlane.f32.xlu2 %v637_v2 }
 0x35c   : > { %v630_v5 = vpop.xlane.xlu2 %629 }
 0x35d   : > { %v2066_v6 = vmax.f32 %v2063_v4, %v630_v5 }
 0x35f   : > { %966 = vst.msk [vmem:[#allocation3] sm:$0xff] %vm796_vm5, %v2066_v6  ;;  %v660_v51 = vsub.f32 %v2063_v4, %v2066_v6 }
 0x361   : > { %v668_v53 = vmul.f32 1.442695, %v660_v51  ;;  %v807_v51 = vld [vmem:[#allocation5 + $0x10] sm:$0xff] }
 0x362   : > { %v642_v8 = vpop.xlane.xlu0 %641 }
 0x363   : > { %v2073_v9 = vmax.f32 %v2070_v7, %v642_v8 }
 0x364   : > { %v1548_v20 = vpop.permute.xlu2 %1547 }
 0x365   : > { %970 = vst.msk [vmem:[#allocation3 + $0x20] sm:$0xff] %vm796_vm5, %v2073_v9  ;;  %v1549_v22 = vunpack.i.l.bf16 %v1548_v20  ;;  %v1550_v23 = vunpack.i.h.bf16 %v1548_v20  ;;  %v664_v62 = vsub.f32 %v2070_v7, %v2073_v9 }
 0x367   : > { %v676_v3 = vmul.f32 1.442695, %v664_v62 }
 0x36c   : > { %v636_v12 = vpop.xlane.xlu1 %635 }
 0x36d   : > { %v2080_v13 = vmax.f32 %v2077_v11, %v636_v12 }
 0x36f   : > { %v662_v14 = vsub.f32 %v2077_v11, %v2080_v13  ;;  %968 = vst.msk [vmem:[#allocation3 + $0x10] sm:$0xff] %vm796_vm5, %v2080_v13  ;;  %696 = vperm.xlu2 %1551, %v2080_v13  }
 0x371   : > { %v672_v57 = vmul.f32 1.442695, %v662_v14 }
 0x374   : > { %v648_v25 = vpop.xlane.xlu1 %647 }
 0x375   : > { %v1538_v16 = vpop.permute.xlu0 %1537  ;;  %v658_v26 = vmax.f32 %v626_v24, %v648_v25 }
 0x376   : > { %v1539_v17 = vunpack.i.l.bf16 %v1538_v16  ;;  %v1540_v18 = vunpack.i.h.bf16 %v1538_v16 }
 0x377   : > { %1553 = vrot.lane.b32.xlu2 %v1552_v15, %s1740_s13  ;;  %972 = vst.msk [vmem:[#allocation3 + $0x30] sm:$0xff] %vm796_vm5, %v658_v26  ;;  %v666_v43 = vsub.f32 %v626_v24, %v658_v26 }
 0x378   : > { %917 = vmatpush.msrb.mxu0 %v1539_v17  ;;  %1414 = vmatpush.msra.mxu2 %v1539_v17 }
 0x379   : > { %v680_v45 = vmul.f32 1.442695, %v666_v43 }
 0x37a   : > { %918 = vmatpush.msrb.mxu0 %v1540_v18  ;;  %1415 = vmatpush.msra.mxu2 %v1540_v18 }
 0x37c   : > { %919 = vmatpush.msrb.mxu0 %v1544_v19  ;;  %1416 = vmatpush.msra.mxu2 %v1544_v19  ;;  %v651_v29 = vpop.xlane.xlu1 %650 }
 0x37d   : > { %v2094_v30 = vmax.f32 %v2091_v27, %v651_v29 }
 0x37e   : > { %920 = vmatpush.msrb.mxu0 %v1545_v21  ;;  %1417 = vmatpush.msra.mxu2 %v1545_v21 }
 0x37f   : > { %973 = vst.msk [vmem:[#allocation3 + $0x38] sm:$0xff] %vm796_vm5, %v2094_v30  ;;  %v667_v5 = vsub.f32 %v2091_v27, %v2094_v30 }
 0x380   : > { %921 = vmatpush.msrb.mxu0 %v1549_v22  ;;  %1418 = vmatpush.msra.mxu2 %v1549_v22 }
 0x382   : > { %922 = vmatpush.msrb.mxu0 %v1550_v23  ;;  %1419 = vmatpush.msra.mxu2 %v1550_v23 }
 0x39d   : > { %v645_v31 = vpop.xlane.xlu2 %644 }
 0x39e   : > { %v657_v32 = vmax.f32 %v625_v28, %v645_v31 }
 0x3a0   : > { %v665_v34 = vsub.f32 %v625_v28, %v657_v32  ;;  %971 = vst.msk [vmem:[#allocation3 + $0x28] sm:$0xff] %vm796_vm5, %v657_v32  ;;  %v633_v35 = vpop.xlane.xlu0 %632  ;;  %711 = vperm.xlu2 %1551, %v657_v32  }
 0x3a1   : > { %v653_v36 = vmax.f32 %v621_v33, %v633_v35 }
 0x3a2   : > { %v678_v37 = vmul.f32 1.442695, %v665_v34 }
 0x3a3   : > { %v661_v38 = vsub.f32 %v621_v33, %v653_v36  ;;  %967 = vst.msk [vmem:[#allocation3 + $0x8] sm:$0xff] %vm796_vm5, %v653_v36  ;;  %691 = vperm.xlu0 %1558, %v653_v36  }
 0x3a4   : > { %1560 = vpow2.f32 %v678_v37 }
 0x3a5   : > { %v670_v40 = vmul.f32 1.442695, %v661_v38  ;;  %v639_v41 = vpop.xlane.xlu2 %638 }
 0x3a6   : > { %v655_v42 = vmax.f32 %v623_v39, %v639_v41 }
 0x3a7   : > { %1562 = vpow2.f32 %v670_v40 }
 0x3a8   : > { %969 = vst.msk [vmem:[#allocation3 + $0x18] sm:$0xff] %vm796_vm5, %v655_v42  ;;  %701 = vperm.xlu1 %1557, %v655_v42   ;;  %686 = vperm.xlu2 %1551, %v2066_v6   ;;  %1564 = vpow2.f32 %v680_v45  ;;  %v663_v47 = vsub.f32 %v623_v39, %v655_v42 }
 0x3aa   : > { %v2102_v44 = vpop.eup %1560  ;;  %v674_v49 = vmul.f32 1.442695, %v663_v47 }
 0x3ab   : > { %840 = vperm.xlu0 %1558, %v2102_v44  }
 0x3ac   : > { %1566 = vpow2.f32 %v674_v49 }
 0x3ad   : > { %v2105_v46 = vpop.eup %1562  ;;  %1568 = vpow2.f32 %v668_v53 }
 0x3ae   : > { %v2109_v48 = vpop.eup %1564  ;;  %1570 = vpow2.f32 %v672_v57 }
 0x3b0   : > { %706 = vperm.xlu1 %1557, %v2073_v9   ;;  %820 = vperm.xlu2 %1551, %v2105_v46   ;;  %v682_v9 = vmul.f32 1.442695, %v667_v5  ;;  %v748_v5 = vld [vmem:[#allocation4] sm:$0xff] }
 0x3b2   : > { %v2114_v56 = vpop.eup %1566 }
 0x3b3   : > { %v2121_v60 = vpop.eup %1568 }
 0x3b4   : > { %v2127_v4 = vpop.eup %1570 }
 0x3b8   : > { %716 = vperm.xlu1 %1557, %v658_v26   ;;  %845 = vperm.xlu2 %1551, %v2109_v48  }
 0x3c0   : > { %721 = vperm.xlu1 %1557, %v2094_v30   ;;  %830 = vperm.xlu2 %1551, %v2114_v56  }
 0x3c8   : > { %815 = vperm.xlu1 %1557, %v2121_v60  }
 0x3c9   : > { %v697_v63 = vpop.permute.xlu2 %696 }
 0x3ca   : > { %v726_v0 = vsub.f32 %v2039_v55, %v697_v63 }
 0x3cc   : > { %v736_v2 = vmul.f32 1.442695, %v726_v0 }
 0x3ce   : > { %1572 = vpow2.f32 %v736_v2 }
 0x3cf   : > { %1574 = vpow2.f32 %v676_v3 }
 0x3d0   : > { %825 = vperm.xlu1 %1557, %v2127_v4   ;;  %1576 = vpow2.f32 %v682_v9 }
 0x3d1   : > { %v1554_v6 = vpop.permute.xlu2 %1553 }
 0x3d2   : > { %v1555_v8 = vunpack.i.l.bf16 %v1554_v6  ;;  %v1556_v7 = vunpack.i.h.bf16 %v1554_v6  ;;  %v756_v6 = vmul.f32 %v2121_v60, %v748_v5  ;;  %v753_v60 = vld [vmem:[#allocation4 + $0x28] sm:$0xff] }
 0x3d4   : > { %v1573_v10 = vpop.eup %1572  ;;  %923 = vmatpush.msrb.mxu0 %v1555_v8  ;;  %1420 = vmatpush.msra.mxu2 %v1555_v8 }
 0x3d5   : > { %v770_v55 = vsel %vm491_vm3, %v1573_v10, 0.0  ;;  %v2133_v11 = vpop.eup %1574 }
 0x3d6   : > { %771 = vadd.xlane.f32.xlu0 %v770_v55  ;;  %924 = vmatpush.msrb.mxu0 %v1556_v7  ;;  %v2137_v12 = vpop.eup %1576 }
 0x3d7   : > { %1421 = vmatpush.msra.mxu2 %v1556_v7  ;;  %v805_v7 = vld [vmem:[#allocation5] sm:$0xff] }
 0x3d8   : > { %1393 = vmatmul.msk.f32.vlgmr.msra.gmra.mxu2 %vm491_vm3, %v1573_v10  ;;  %835 = vperm.xlu1 %1557, %v2133_v11  }
 0x3e0   : > { %850 = vperm.xlu1 %1557, %v2137_v12  }
 0x3fa   : > { %v712_v13 = vpop.permute.xlu2 %711 }
 0x3fb   : > { %v729_v21 = vsub.f32 %v2045_v58, %v712_v13 }
 0x3fd   : > { %v742_v25 = vmul.f32 1.442695, %v729_v21 }
 0x402   : > { %v687_v14 = vpop.permute.xlu2 %686 }
 0x403   : > { %v724_v15 = vsub.f32 %v2029_v50, %v687_v14 }
 0x405   : > { %v732_v16 = vmul.f32 1.442695, %v724_v15  ;;  %v749_v15 = vld [vmem:[#allocation4 + $0x8] sm:$0xff] }
 0x407   : > { %1578 = vpow2.f32 %v732_v16  ;;  %v757_v16 = vmul.f32 %v2105_v46, %v749_v15 }
 0x40a   : > { %v821_v0 = vpop.permute.xlu2 %820 }
 0x40d   : > { %v1579_v17 = vpop.eup %1578 }
 0x40e   : > { %1391 = vmatmul.msk.f32.vlgmr.msrb.gmra.mxu0 %vm491_vm3, %v1579_v17  ;;  %v764_v18 = vsel %vm491_vm3, %v1579_v17, 0.0 }
 0x40f   : > { %765 = vadd.xlane.f32.xlu2 %v764_v18 }
 0x412   : > { %v2166_v2 = vpop.permute.xlu2 %845 }
 0x415   : > { %v692_v19 = vpop.permute.xlu0 %691 }
 0x416   : > { %v725_v20 = vsub.f32 %v2037_v54, %v692_v19  ;;  %v806_v19 = vld [vmem:[#allocation5 + $0x8] sm:$0xff] }
 0x417   : > { %v854_v21 = vmul.f32 %v821_v0, %v806_v19 }
 0x418   : > { %v734_v22 = vmul.f32 1.442695, %v725_v20  ;;  %v761_v20 = vmul.f32 %v2102_v44, %v753_v60 }
 0x41a   : > { %1580 = vpow2.f32 %v734_v22  ;;  %v702_v23 = vpop.permute.xlu1 %701  ;;  %v831_v3 = vpop.permute.xlu2 %830 }
 0x41b   : > { %v727_v24 = vsub.f32 %v2059_v1, %v702_v23 }
 0x41d   : > { %v738_v50 = vmul.f32 1.442695, %v727_v24  ;;  %v2160_v42 = vpop.permute.xlu0 %840 }
 0x41f   : > { %1582 = vpow2.f32 %v738_v50 }
 0x420   : > { %v1581_v26 = vpop.eup %1580  ;;  %1584 = vpow2.f32 %v742_v25  ;;  %v752_v25 = vld [vmem:[#allocation4 + $0x20] sm:$0xff] }
 0x421   : > { %1392 = vmatmul.msk.f32.gmra.mxu0 %vm491_vm3, %v1581_v26  ;;  %v767_v27 = vsel %vm491_vm3, %v1581_v26, 0.0  ;;  %v760_v46 = vmul.f32 %v2133_v11, %v752_v25  ;;  %v809_v11 = vld [vmem:[#allocation5 + $0x20] sm:$0xff] }
 0x422   : > { %768 = vadd.xlane.f32.xlu1 %v767_v27  ;;  %v707_v28 = vpop.permute.xlu1 %706 }
 0x423   : > { %v728_v54 = vsub.f32 %v2033_v52, %v707_v28  ;;  %v808_v28 = vld [vmem:[#allocation5 + $0x18] sm:$0xff] }
 0x424   : > { %v856_v44 = vmul.f32 %v831_v3, %v808_v28 }
 0x425   : > { %v1583_v29 = vpop.eup %1582  ;;  %v740_v58 = vmul.f32 1.442695, %v728_v54  ;;  %v754_v54 = vld [vmem:[#allocation4 + $0x30] sm:$0xff] }
 0x426   : > { %v1585_v30 = vpop.eup %1584  ;;  %1394 = vmatmul.msk.f32.gmra.mxu2 %vm491_vm3, %v1583_v29  ;;  %v773_v40 = vsel %vm491_vm3, %v1583_v29, 0.0  ;;  %v751_v29 = vld [vmem:[#allocation4 + $0x18] sm:$0xff] }
 0x427   : > { %1586 = vpow2.f32 %v740_v58  ;;  %v779_v1 = vsel %vm491_vm3, %v1585_v30, 0.0 }
 0x42a   : > { %v717_v31 = vpop.permute.xlu1 %716  ;;  %780 = vadd.xlane.f32.xlu1 %v779_v1  ;;  %v759_v1 = vmul.f32 %v2114_v56, %v751_v29 }
 0x42b   : > { %v730_v32 = vsub.f32 %v2047_v59, %v717_v31 }
 0x42d   : > { %v1587_v33 = vpop.eup %1586  ;;  %v744_v34 = vmul.f32 1.442695, %v730_v32 }
 0x42e   : > { %1395 = vmatmul.msk.f32.gmra.mxu2 %vm491_vm3, %v1587_v33  ;;  %v776_v35 = vsel %vm491_vm3, %v1587_v33, 0.0 }
 0x42f   : > { %1588 = vpow2.f32 %v744_v34  ;;  %777 = vadd.xlane.f32.xlu2 %v776_v35 }
 0x432   : > { %v722_v52 = vpop.permute.xlu1 %721 }
 0x433   : > { %v731_v36 = vsub.f32 %v2051_v61, %v722_v52  ;;  %v750_v61 = vld [vmem:[#allocation4 + $0x10] sm:$0xff]  ;;  %v755_v52 = vld [vmem:[#allocation4 + $0x38] sm:$0xff] }
 0x434   : > { %v758_v43 = vmul.f32 %v2127_v4, %v750_v61 }
 0x435   : > { %v1589_v37 = vpop.eup %1588  ;;  %v746_v38 = vmul.f32 1.442695, %v731_v36 }
 0x436   : > { %1396 = vmatmul.msk.f32.gmra.mxu2 %vm491_vm3, %v1585_v30  ;;  %v782_v39 = vsel %vm491_vm3, %v1589_v37, 0.0  ;;  %v762_v30 = vmul.f32 %v2109_v48, %v754_v54 }
 0x437   : > { %1590 = vpow2.f32 %v746_v38  ;;  %783 = vadd.xlane.f32.xlu0 %v782_v39  ;;  %774 = vadd.xlane.f32.xlu2 %v773_v40  ;;  %v763_v38 = vmul.f32 %v2137_v12, %v755_v52  ;;  %v810_v40 = vld [vmem:[#allocation5 + $0x28] sm:$0xff]  ;;  %v812_v12 = vld [vmem:[#allocation5 + $0x38] sm:$0xff] }
 0x43a   : > { %v816_v49 = vpop.permute.xlu1 %815 }
 0x43b   : > { %v853_v9 = vmul.f32 %v816_v49, %v805_v7 }
 0x43d   : > { %v1591_v59 = vpop.eup %1590 }
 0x43e   : > { %1397 = vmatmul.msk.f32.gmra.mxu2 %vm491_vm3, %v1589_v37  ;;  %v785_v41 = vsel %vm491_vm3, %v1591_v59, 0.0 }
 0x43f   : > { %786 = vadd.xlane.f32.xlu2 %v785_v41 }
 0x442   : > { %v826_v53 = vpop.permute.xlu1 %825 }
 0x443   : > { %v855_v57 = vmul.f32 %v826_v53, %v807_v51 }
 0x446   : > { %1398 = vmatmul.msk.f32.gmra.mxu2 %vm491_vm3, %v1591_v59  ;;  %v858_v59 = vmul.f32 %v2160_v42, %v810_v40 }
 0x449   : > { %v772_v45 = vpop.xlane.xlu0 %771 }
 0x44a   : > { %v790_v47 = vadd.f32 %v772_v45, %v758_v43  ;;  %v836_v8 = vpop.permute.xlu1 %835  ;;  %v811_v43 = vld [vmem:[#allocation5 + $0x30] sm:$0xff] }
 0x44b   : > { %v857_v36 = vmul.f32 %v836_v8, %v809_v11  ;;  %v859_v45 = vmul.f32 %v2166_v2, %v811_v43 }
 0x44c   : > { %799 = vst.msk [vmem:[#allocation4 + $0x10] sm:$0xff] %vm796_vm5, %v790_v47 }
 0x452   : > { %v851_v14 = vpop.permute.xlu1 %850 }
 0x453   : > { %v860_v51 = vmul.f32 %v851_v14, %v812_v12 }
 0x45b   : > { %v932_v62 = vpop.f32.mrf.mxu2 }
 0x45c   : > { %v952_v63 = vadd.f32 %v932_v62, %v855_v57 }
 0x45e   : > { %960 = vst.msk [vmem:[#allocation5 + $0x10] sm:$0xff] %vm538_vm4, %v952_v63 }
 0x482   : > { %v766_v4 = vpop.xlane.xlu2 %765 }
 0x483   : > { %v788_v10 = vadd.f32 %v766_v4, %v756_v6 }
 0x485   : > { %797 = vst.msk [vmem:[#allocation4] sm:$0xff] %vm796_vm5, %v788_v10 }
 0x48b   : > { %v926_v55 = vpop.f32.mrf.mxu0 }
 0x48c   : > { %v950_v13 = vadd.f32 %v926_v55, %v853_v9 }
 0x48e   : > { %958 = vst.msk [vmem:[#allocation5] sm:$0xff] %vm538_vm4, %v950_v13 }
 0x495   : > { %v769_v17 = vpop.xlane.xlu1 %768 }
 0x496   : > { %v789_v18 = vadd.f32 %v769_v17, %v757_v16 }
 0x498   : > { %798 = vst.msk [vmem:[#allocation4 + $0x8] sm:$0xff] %vm796_vm5, %v789_v18 }
 0x49d   : > { %v781_v22 = vpop.xlane.xlu1 %780 }
 0x49e   : > { %v793_v23 = vadd.f32 %v781_v22, %v761_v20  ;;  %v929_v24 = vpop.f32.mrf.mxu0 }
 0x49f   : > { %v951_v50 = vadd.f32 %v929_v24, %v854_v21 }
 0x4a0   : > { %802 = vst.msk [vmem:[#allocation4 + $0x28] sm:$0xff] %vm796_vm5, %v793_v23 }
 0x4a1   : > { %959 = vst.msk [vmem:[#allocation5 + $0x8] sm:$0xff] %vm538_vm4, %v951_v50 }
 0x4a2   : > { %v778_v26 = vpop.xlane.xlu2 %777 }
 0x4a3   : > { %v792_v27 = vadd.f32 %v778_v26, %v760_v46 }
 0x4a5   : > { %801 = vst.msk [vmem:[#allocation4 + $0x20] sm:$0xff] %vm796_vm5, %v792_v27 }
 0x4a9   : > { %v935_v58 = vpop.f32.mrf.mxu2 }
 0x4aa   : > { %v953_v31 = vadd.f32 %v935_v58, %v856_v44  ;;  %v784_v32 = vpop.xlane.xlu0 %783  ;;  %v775_v33 = vpop.xlane.xlu2 %774 }
 0x4ab   : > { %v794_v34 = vadd.f32 %v784_v32, %v762_v30  ;;  %v791_v35 = vadd.f32 %v775_v33, %v759_v1 }
 0x4ac   : > { %961 = vst.msk [vmem:[#allocation5 + $0x18] sm:$0xff] %vm538_vm4, %v953_v31 }
 0x4ad   : > { %803 = vst.msk [vmem:[#allocation4 + $0x30] sm:$0xff] %vm796_vm5, %v794_v34 }
 0x4ae   : > { %800 = vst.msk [vmem:[#allocation4 + $0x18] sm:$0xff] %vm796_vm5, %v791_v35 }
 0x4b1   : > { %v938_v37 = vpop.f32.mrf.mxu2 }
 0x4b2   : > { %v954_v48 = vadd.f32 %v938_v37, %v857_v36  ;;  %v787_v39 = vpop.xlane.xlu2 %786 }
 0x4b3   : > { %v795_v56 = vadd.f32 %v787_v39, %v763_v38 }
 0x4b4   : > { %962 = vst.msk [vmem:[#allocation5 + $0x20] sm:$0xff] %vm538_vm4, %v954_v48 }
 0x4b5   : > { %804 = vst.msk [vmem:[#allocation4 + $0x38] sm:$0xff] %vm796_vm5, %v795_v56 }
 0x4b9   : > { %v941_v41 = vpop.f32.mrf.mxu2 }
 0x4ba   : > { %v955_v61 = vadd.f32 %v941_v41, %v858_v59 }
 0x4bc   : > { %963 = vst.msk [vmem:[#allocation5 + $0x28] sm:$0xff] %vm538_vm4, %v955_v61 }
 0x4c1   : > { %v944_v47 = vpop.f32.mrf.mxu2 }
 0x4c2   : > { %v956_v49 = vadd.f32 %v944_v47, %v859_v45 }
 0x4c4   : > { %964 = vst.msk [vmem:[#allocation5 + $0x30] sm:$0xff] %vm538_vm4, %v956_v49 }
 0x4c8   : > { %977 = sbr.rel (%p1399_p3) target bundleno = 1628 (0x65c), region = 60 }
 0x4c9   : > { %v947_v53 = vpop.f32.mrf.mxu2 }
 0x4ca   : > { %v957_v57 = vadd.f32 %v947_v53, %v860_v51 }
 0x4cc   : > { %965 = vst.msk [vmem:[#allocation5 + $0x38] sm:$0xff] %vm538_vm4, %v957_v57 }
 0x4cd   : > { %v989_v42 = vld [vmem:[#allocation4 + $0x18] sm:$0xff]  ;;  %v987_v62 = vld [vmem:[#allocation4 + $0x8] sm:$0xff]  ;;  %v2192_v63 = vld [vmem:[#allocation4 + $0x20] sm:$0xff]  ;;  %v1742_v0 = vmov 0  }
 0x4ce   : > { %1593 = vset.pattern.permute.xlu1 %v1742_v0  ;;  %1592 = vset.pattern.permute.xlu0 %v1742_v0  ;;  %1596 = vrcp.f32 %v989_v42  ;;  %v2194_v2 = vld [vmem:[#allocation4 + $0x10] sm:$0xff]  ;;  %v1048_v3 = vand.u32 2147483647, %v989_v42  ;;  %v2197_v5 = vld [vmem:[#allocation4 + $0x38] sm:$0xff]  ;;  %v1050_v6 = vand.u32 2147483648, %v989_v42  ;;  %v1020_v8 = vand.u32 2147483648, %v987_v62 }
 0x4cf   : > { %1598 = vrcp.f32 %v987_v62  ;;  %1594 = vset.pattern.permute.xlu2 %v1742_v0  ;;  %v1018_v4 = vand.u32 2147483647, %v987_v62  ;;  %v2200_v10 = vld [vmem:[#allocation4] sm:$0xff]  ;;  %vm1044_vm6 = vweird.f32 %v989_v42  ;;  %vm1014_vm8 = vweird.f32 %v987_v62  ;;  %v2209_v15 = vld [vmem:[#allocation4 + $0x28] sm:$0xff]  ;;  %v992_v49 = vld [vmem:[#allocation4 + $0x30] sm:$0xff] }
 0x4d0   : > { %1600 = vrcp.f32 %v2192_v63  ;;  %vm2203_vm7 = vcmp.eq.f32.partialorder %v1048_v3, 8.507059e+37  ;;  %v1051_v14 = vor.u32 1.1754944e-38, %v1050_v6  ;;  %vm1059_vm9 = vweird.f32 %v2192_v63  ;;  %v979_v1 = vld [vmem:[#allocation5 + $0x8] sm:$0xff]  ;;  %v1210_v45 = vld [vmem:[%s2429_s6 + $0x38] sm:$0xff] }
 0x4d1   : > { %1602 = vrcp.f32 %v2194_v2  ;;  %vm2213_vm10 = vcmp.eq.f32.partialorder %v1018_v4, 8.507059e+37  ;;  %v1021_v60 = vor.u32 1.1754944e-38, %v1020_v8  ;;  %v1063_v19 = vand.u32 2147483647, %v2192_v63  ;;  %1226 = vmatpush.msra.mxu0 %v1210_v45 }
 0x4d2   : > { %1604 = vrcp.f32 %v2197_v5  ;;  %v1065_v22 = vand.u32 2147483648, %v2192_v63  ;;  %vm1029_vm13 = vweird.f32 %v2194_v2  ;;  %v1033_v27 = vand.u32 2147483647, %v2194_v2 }
 0x4d3   : > { %1606 = vrcp.f32 %v2200_v10  ;;  %v1035_v29 = vand.u32 2147483648, %v2194_v2  ;;  %vm2248_vm1 = vcmp.eq.f32.partialorder %v1063_v19, 8.507059e+37  ;;  %v1078_v53 = vand.u32 2147483647, %v2209_v15 }
 0x4d4   : > { %v1597_v7 = vpop.eup %1596  ;;  %1608 = vrcp.f32 %v2209_v15  ;;  %v1066_v35 = vor.u32 1.1754944e-38, %v1065_v22  ;;  %v1003_v3 = vand.u32 2147483647, %v2200_v10  ;;  %v1005_v8 = vand.u32 2147483648, %v2200_v10 }
 0x4d5   : > { %v1599_v55 = vpop.eup %1598  ;;  %v1040_v13 = vmul.f32 %v1597_v7, %v989_v42  ;;  %vm1045_vm11 = vweird.f32 %v1597_v7  ;;  %v1036_v51 = vor.u32 1.1754944e-38, %v1035_v29  ;;  %1610 = vrcp.f32 %v992_v49 }
 0x4d6   : > { %v2211_v16 = vpop.eup %1600  ;;  %v1010_v17 = vmul.f32 %v1599_v55, %v987_v62  ;;  %vm1015_vm12 = vweird.f32 %v1599_v55  ;;  %vm2231_vm14 = vmor %vm1044_vm6, %vm1045_vm11  ;;  %vm1104_vm6 = vweird.f32 %v2197_v5  ;;  %v1080_v62 = vand.u32 2147483648, %v2209_v15 }
 0x4d7   : > { %v1041_v20 = vsub.f32 1.0, %v1040_v13  ;;  %v1055_v21 = vmul.f32 %v2211_v16, %v2192_v63  ;;  %v2221_v23 = vpop.eup %1602  ;;  %vm1060_vm15 = vweird.f32 %v2211_v16  ;;  %vm2243_vm0 = vmor %vm1014_vm8, %vm1015_vm12  ;;  %vm999_vm11 = vweird.f32 %v2200_v10 }
 0x4d8   : > { %v1011_v24 = vsub.f32 1.0, %v1010_v17  ;;  %v2225_v25 = vpop.eup %1604  ;;  %v1025_v26 = vmul.f32 %v2221_v23, %v2194_v2  ;;  %vm1030_vm2 = vweird.f32 %v2221_v23  ;;  %vm2262_vm5 = vmor %vm1059_vm9, %vm1060_vm15  ;;  %vm1074_vm9 = vweird.f32 %v2209_v15 }
 0x4d9   : > { %v1042_v50 = vmul.f32 %v1597_v7, %v1041_v20  ;;  %v1056_v46 = vsub.f32 1.0, %v1055_v21  ;;  %v1100_v44 = vmul.f32 %v2225_v25, %v2197_v5  ;;  %v2239_v58 = vpop.eup %1606  ;;  %vm2279_vm8 = vmor %vm1029_vm13, %vm1030_vm2  ;;  %v1110_v2 = vand.u32 2147483648, %v2197_v5 }
 0x4da   : > { %v1012_v54 = vmul.f32 %v1599_v55, %v1011_v24  ;;  %v1026_v33 = vsub.f32 1.0, %v1025_v26  ;;  %v995_v11 = vmul.f32 %v2239_v58, %v2200_v10  ;;  %v1609_v48 = vpop.eup %1608  ;;  %vm1000_vm12 = vweird.f32 %v2239_v58 }
 0x4db   : > { %v1043_v30 = vadd.f32 %v1597_v7, %v1042_v50  ;;  %v1057_v31 = vmul.f32 %v2211_v16, %v1056_v46  ;;  %v1101_v40 = vsub.f32 1.0, %v1100_v44  ;;  %v1070_v47 = vmul.f32 %v1609_v48, %v2209_v15  ;;  %v1611_v19 = vpop.eup %1610 }
 0x4dc   : > { %v1013_v34 = vadd.f32 %v1599_v55, %v1012_v54  ;;  %v1027_v38 = vmul.f32 %v2221_v23, %v1026_v33  ;;  %v996_v59 = vsub.f32 1.0, %v995_v11  ;;  %vm1105_vm13 = vweird.f32 %v2225_v25  ;;  %v984_v11 = vld [vmem:[#allocation5 + $0x30] sm:$0xff] }
 0x4dd   : > { %v1047_v52 = vsel %vm2231_vm14, %v1597_v7, %v1043_v30  ;;  %v1058_v36 = vadd.f32 %v2211_v16, %v1057_v31  ;;  %v1071_v42 = vsub.f32 1.0, %v1070_v47  ;;  %v1102_v0 = vmul.f32 %v2225_v25, %v1101_v40  ;;  %v983_v40 = vld [vmem:[#allocation5 + $0x28] sm:$0xff]  ;;  %v1209_v47 = vld [vmem:[%s2429_s6 + $0x30] sm:$0xff] }
 0x4de   : > { %v1052_v39 = vsel %vm2203_vm7, %v1051_v14, %v1047_v52  ;;  %v1017_v56 = vsel %vm2243_vm0, %v1599_v55, %v1013_v34  ;;  %v1028_v61 = vadd.f32 %v2221_v23, %v1027_v38  ;;  %vm2283_vm7 = vcmp.eq.f32.partialorder %v1033_v27, 8.507059e+37  ;;  %vm2320_vm0 = vmor %vm999_vm11, %vm1000_vm12  ;;  %v982_v52 = vld [vmem:[#allocation5 + $0x20] sm:$0xff]  ;;  %1227 = vmatpush.msra.mxu0 %v1209_v47 }
 0x4df   : > { %1131 = vperm.xlu1 %1593, %v1052_v39   ;;  %v1022_v41 = vsel %vm2213_vm10, %v1021_v60, %v1017_v56  ;;  %v1062_v12 = vsel %vm2262_vm5, %v2211_v16, %v1058_v36  ;;  %v997_v57 = vmul.f32 %v2239_v58, %v996_v59  ;;  %vm1075_vm10 = vweird.f32 %v1609_v48  ;;  %v980_v36 = vld [vmem:[#allocation5 + $0x10] sm:$0xff]  ;;  %v985_v59 = vld [vmem:[#allocation5 + $0x38] sm:$0xff] }
 0x4e0   : > { %1121 = vperm.xlu0 %1592, %v1022_v41   ;;  %v1032_v63 = vsel %vm2279_vm8, %v2221_v23, %v1028_v61  ;;  %v1072_v6 = vmul.f32 %v1609_v48, %v1071_v42  ;;  %v1067_v4 = vsel %vm2248_vm1, %v1066_v35, %v1062_v12  ;;  %vm2309_vm14 = vmor %vm1074_vm9, %vm1075_vm10  ;;  %v1081_v9 = vor.u32 1.1754944e-38, %v1080_v62  ;;  %v1207_v12 = vld [vmem:[%s2429_s6 + $0x20] sm:$0xff] }
 0x4e1   : > { %v1037_v55 = vsel %vm2283_vm7, %v1036_v51, %v1032_v63  ;;  %v998_v13 = vadd.f32 %v2239_v58, %v997_v57  ;;  %vm1079_vm15 = vcmp.eq.f32.partialorder %v1078_v53, 8.507059e+37  ;;  %v1103_v16 = vadd.f32 %v2225_v25, %v1102_v0  ;;  %vm2326_vm1 = vmor %vm1104_vm6, %vm1105_vm13  ;;  %v1206_v51 = vld [vmem:[%s2429_s6 + $0x18] sm:$0xff]  ;;  %v1205_v53 = vld [vmem:[%s2429_s6 + $0x10] sm:$0xff] }
 0x4e2   : > { %v1073_v14 = vadd.f32 %v1609_v48, %v1072_v6  ;;  %v1108_v17 = vand.u32 2147483647, %v2197_v5  ;;  %v1006_v20 = vor.u32 1.1754944e-38, %v1005_v8  ;;  %v1111_v22 = vor.u32 1.1754944e-38, %v1110_v2  ;;  %v1204_v57 = vld [vmem:[%s2429_s6 + $0x8] sm:$0xff]  ;;  %v1203_v42 = vld [vmem:[%s2429_s6] sm:$0xff] }
 0x4e3   : > { %v1002_v10 = vsel %vm2320_vm0, %v2239_v58, %v998_v13  ;;  %vm1004_vm2 = vcmp.eq.f32.partialorder %v1003_v3, 8.507059e+37  ;;  %v1085_v23 = vmul.f32 %v1611_v19, %v992_v49  ;;  %v1107_v5 = vsel %vm2326_vm1, %v2225_v25, %v1103_v16  ;;  %v981_v25 = vld [vmem:[#allocation5 + $0x18] sm:$0xff]  ;;  %v978_v0 = vld [vmem:[#allocation5] sm:$0xff] }
 0x4e4   : > { %v1077_v60 = vsel %vm2309_vm14, %v1609_v48, %v1073_v14  ;;  %vm1109_vm5 = vcmp.eq.f32.partialorder %v1108_v17, 8.507059e+37  ;;  %v1095_v24 = vand.u32 2147483648, %v992_v49  ;;  %vm1089_vm6 = vweird.f32 %v992_v49 }
 0x4e5   : > { %v1082_v21 = vsel %vm1079_vm15, %v1081_v9, %v1077_v60  ;;  %v1086_v50 = vsub.f32 1.0, %v1085_v23  ;;  %vm1090_vm8 = vweird.f32 %v1611_v19  ;;  %v1093_v46 = vand.u32 2147483647, %v992_v49  ;;  %v1208_v49 = vld [vmem:[%s2429_s6 + $0x28] sm:$0xff]  ;;  %v1595_v60 = vld [vmem:[%s2430_s7] ss:$0 sm:$0xff] }
 0x4e6   : > { %1141 = vperm.xlu2 %1594, %v1082_v21   ;;  %v1007_v26 = vsel %vm1004_vm2, %v1006_v20, %v1002_v10  ;;  %v1112_v27 = vsel %vm1109_vm5, %v1111_v22, %v1107_v5  ;;  %vm1091_vm7 = vmor %vm1089_vm6, %vm1090_vm8  ;;  %v1096_v54 = vor.u32 1.1754944e-38, %v1095_v24  ;;  %1228 = vmatpush.msra.mxu0 %v1208_v49  ;;  %vm1191_vm10 = vcmask 130048  }
 0x4e7   : > { %1136 = vperm.xlu1 %1593, %v1067_v4   ;;  %v1087_v28 = vmul.f32 %v1611_v19, %v1086_v50  ;;  %vm1094_vm9 = vcmp.eq.f32.partialorder %v1093_v46, 8.507059e+37  ;;  %vm1193_vm11 = vcmask 195584   ;;  %vm1195_vm12 = vcmask 261120  }
 0x4e8   : > { %1126 = vperm.xlu0 %1592, %v1037_v55   ;;  %1229 = vmatpush.msra.mxu0 %v1207_v12  ;;  %vm1197_vm13 = vcmask 326656   ;;  %vm1199_vm14 = vcmask 392192   ;;  %vm1201_vm15 = vcmask 457728  }
 0x4e9   : > { %v1088_v29 = vadd.f32 %v1611_v19, %v1087_v28 }
 0x4ea   : > { %1230 = vmatpush.msra.mxu0 %v1206_v51 }
 0x4eb   : > { %v1092_v44 = vsel %vm1091_vm7, %v1611_v19, %v1088_v29 }
 0x4ec   : > { %v1097_v58 = vsel %vm1094_vm9, %v1096_v54, %v1092_v44  ;;  %1231 = vmatpush.msra.mxu0 %v1205_v53 }
 0x4ee   : > { %1146 = vperm.xlu2 %1594, %v1097_v58   ;;  %1232 = vmatpush.msra.mxu0 %v1204_v57 }
 0x4ef   : > { %1116 = vperm.xlu1 %1593, %v1007_v26  }
 0x4f0   : > { %1151 = vperm.xlu0 %1592, %v1112_v27   ;;  %1233 = vmatpush.msra.mxu0 %v1203_v42 }
 0x540   : > { %v1142_v30 = vpop.permute.xlu2 %1141 }
 0x541   : > { %v1159_v61 = vmul.f32 %v1142_v30, %v983_v40 }
 0x548   : > { %v1147_v35 = vpop.permute.xlu2 %1146 }
 0x549   : > { %v1160_v37 = vmul.f32 %v1147_v35, %v984_v11 }
 0x551   : > { %v1132_v31 = vpop.permute.xlu1 %1131 }
 0x552   : > { %v1157_v32 = vmul.f32 %v1132_v31, %v981_v25  ;;  %v1122_v33 = vpop.permute.xlu0 %1121 }
 0x553   : > { %v1155_v34 = vmul.f32 %v1122_v33, %v979_v1 }
 0x554   : > { %1171 = vrot.lane.b32.xlu1 %v1157_v32, %s1743_s30 }
 0x555   : > { %1163 = vrot.lane.b32.xlu2 %v1155_v34, %s1744_s29 }
 0x559   : > { %v1137_v38 = vpop.permute.xlu1 %1136 }
 0x55a   : > { %v1158_v48 = vmul.f32 %v1137_v38, %v982_v52  ;;  %v1127_v39 = vpop.permute.xlu0 %1126 }
 0x55b   : > { %v1156_v56 = vmul.f32 %v1127_v39, %v980_v36 }
 0x55c   : > { %1183 = vrot.lane.b32.xlu1 %v1160_v37, %s1745_s27 }
 0x55d   : > { %1167 = vrot.lane.b32.xlu0 %v1156_v56, %s1746_s17  ;;  %1175 = vrot.lane.b32.xlu2 %v1158_v48, %s1747_s19 }
 0x561   : > { %v1117_v63 = vpop.permute.xlu1 %1116 }
 0x562   : > { %v1152_v41 = vpop.permute.xlu0 %1151  ;;  %v1154_v2 = vmul.f32 %v1117_v63, %v978_v0 }
 0x563   : > { %v1161_v43 = vmul.f32 %v1152_v41, %v985_v59 }
 0x565   : > { %1179 = vrot.lane.b32.xlu0 %v1159_v61, %s1748_s21  ;;  %1187 = vrot.lane.b32.xlu2 %v1161_v43, %s1749_s26 }
 0x5af   : > { %v1164_v62 = vpop.permute.xlu2 %1163 }
 0x5b0   : > { %v1190_v8 = vsel %vm538_vm4, %v1154_v2, %v1164_v62 }
 0x5b7   : > { %v1176_v6 = vpop.permute.xlu2 %1175 }
 0x5bf   : > { %v1188_v17 = vpop.permute.xlu2 %1187 }
 0x5c6   : > { %v1172_v3 = vpop.permute.xlu1 %1171 }
 0x5ce   : > { %v1184_v14 = vpop.permute.xlu1 %1183 }
 0x5cf   : > { %v1168_v4 = vpop.permute.xlu0 %1167 }
 0x5d0   : > { %v1192_v7 = vsel %vm1191_vm10, %v1190_v8, %v1168_v4 }
 0x5d1   : > { %v1194_v9 = vsel %vm1193_vm11, %v1192_v7, %v1172_v3 }
 0x5d2   : > { %v1196_v13 = vsel %vm1195_vm12, %v1194_v9, %v1176_v6 }
 0x5d7   : > { %v1180_v55 = vpop.permute.xlu0 %1179 }
 0x5d8   : > { %v1198_v16 = vsel %vm1197_vm13, %v1196_v13, %v1180_v55 }
 0x5d9   : > { %v1200_v15 = vsel %vm1199_vm14, %v1198_v16, %v1184_v14 }
 0x5da   : > { %v1202_v18 = vsel %vm1201_vm15, %v1200_v15, %v1188_v17 }
 0x5db   : > { %1400 = vmatmul.msk.f32.vlgmr.msra.gmra.mxu0 %vm491_vm3, %v1202_v18 }
 0x658   : > { %v1235_v19 = vpop.f32.mrf.mxu0 }
 0x659   : > { %v1236_v20 = vadd.f32 %v1595_v60, %v1235_v19 }
 0x65b   : > { %1238 = vst.msk [vmem:[%s360_s8] sm:$0xff] %vm491_vm3, %v1236_v20 }
 0x65c PF: > { %s1402_s23 = sshll.u32 %s1706_s10, 3  ;;  %s1254_s22 = sshll.u32 %s360_s8, 4  ;;  %s1255_s22 = int_to_ptr.vmem [resolvable:$true] %s1254_s22 }
 0x65d   : > { %s1250_s25 = sadd.s32 %s1702_s9, %s1402_s23  ;;  %s2480_s18 = sld [smem:[#allocation20_spill]] }
 0x65e   : > { %s1403_s24 = sshll.u32 %s1250_s25, 3  ;;  %s2481_s30 = sand.u32 1, %s1690_s28  }
 0x65f   : > { %s1240_s29 = scalar_lea.sflag [#allocation7], %s2481_s30 }
 0x663   : > { %s1252_s12 = scalar_lea.hbm %s2480_s18, %s1403_s24  ;;  %s1632_s8 = scalar_lea.hbm %s2480_s18, 128 }
 0x664   : > { %s1256_s13 = sshll.u32 %s1252_s12, 4  ;;  %s1257_s13 = int_to_ptr.hbm [resolvable:$true] %s1256_s13 }
 0x665   : > { %s1626_s27 = sshra.s32 %s1257_s13, 4  ;;  %s1627_s27 = int_to_ptr.hbm [resolvable:$true] %s1626_s27 }
 0x666   : > { %s1628_s17 = scalar_lea.hbm %s1627_s27, 8  ;;  %p1633_p9 = scmp.lt.s32.totalorder %s1627_s27, %s2480_s18 }
 0x667   : > { %p1629_p4 = scmp.ne.s32.totalorder %s1627_s27, %s1628_s17  ;;  %p1634_p10 = scmp.lt.s32.totalorder %s1632_s8, %s1628_s17 }
 0x669   : > { %p1630_p5 = pnand %p1629_p4, %p1857_p6  ;;  %p1635_p11 = por %p1634_p10, %p1633_p9 }
 0x66b   : > { %p1631_p8 = pneg %p1630_p5 }
 0x66d   : > { %p1636_p12 = pnand %p1635_p11, %p1631_p8 }
 0x66f   : > { %1639 = shalt.err (!%p1636_p12)
}
 0x670   : > { %1422 = dma.vmem_to_hbm [thread:$0]  (%p1857_p6), %s1255_s22, 128, %s1257_s13, %s1240_s29  }
 0x671 PF: > { %s2482_s21 = sld [smem:[#allocation14_spill]] }
 0x672   : > { %s2483_s26 = sld [smem:[#allocation9_spill]] }
 0x677   : > { %p1428_p13 = scmp.ge.s32.totalorder %s2482_s21, 2 }
 0x678   : > { %s1268_s23 = sand.u32 1, %s2483_s26  }
 0x679   : > { %p1425_p0 = pnand %p1428_p13, %p1864_p7  ;;  %s1269_s25 = scalar_lea.sflag [#allocation7], %s1268_s23 }
 0x67b   : > { %p1426_p1 = pneg %p1425_p0 }
 0x67d   : > { %1681 = dma.done.wait (%p1426_p1), %s1269_s25, 128  }
 0x67e   : > { %1683 = vsyncadd (%p1426_p1), %s1269_s25, 4294967168  ;;  %s21_s14 = sadd.s32 1, %s2482_s21   ;;  %s2485_s24 = sld [smem:[#allocation10_spill]] }
 0x67f   : > { %p18_p2 = scmp.ge.s32.totalorder %s21_s14, 34   ;;  %s2486_s29 = sld [smem:[#allocation19_spill]] }
 0x680   : > { %s2487_s30 = sld [smem:[#allocation11_spill]]  ;;  %s2493_s27 = smov %s1690_s28 }
 0x681   : > { %s2488_s9 = sld [smem:[#allocation12_spill]]  ;;  %20 = sbr.rel (!%p18_p2) target bundleno = 8 (0x8), region = 98 }
 0x682   : > { %s2489_s10 = sld [smem:[#allocation13_spill]] }
 0x683   : > { %s2490_s11 = sld [smem:[#allocation15_spill]] }
 0x684   : > { %s2491_s12 = sld [smem:[#allocation16_spill]]  ;;  %s2494_s28 = smov %s2485_s24 }
 0x685   : > { %s2492_s13 = sld [smem:[#allocation18_spill]] }
 0x686   :  { %1275 = vsyncpa [#allocation7], 1 }
 0x687   :  { %1277 = vsyncpa [#allocation7 + $0x1], 1 }

</bundles_post_ra>
